<compile_context>
chip_gen: v6e
topology: v6e:2x2x1
jax: 0.10.0
libtpu: 0.0.40
codegen_flags: <defaults>
</compile_context>

<pallas_src>
import functools

import jax
import jax.numpy as jnp
from jax.experimental import pallas as pl
from jax.experimental.pallas import tpu as pltpu

EPS = 1e-5


def _residual_block_kernel(xp_ref, bw1_ref, bw2_ref, g1_ref, bt1_ref,
                           g2_ref, bt2_ref, sel_ref, selT_ref, mask_ref,
                           out_ref, *, N, H, W, C):
    """Whole residual block on a lane-dense (R_pad, W*C) slab.

    xp_ref   : (R_pad, WC)    H-padded input rows (halo/pad rows are zero)
    bw*_ref  : (WC, 3*WC)     banded conv weights, dy taps concatenated on N
    g*_ref   : (1, WC)        BN gamma tiled to the W*C lane layout
    bt*_ref  : (1, WC)        BN beta  tiled to the W*C lane layout
    sel_ref  : (WC, C)        0/1 fold matrix: W*C lanes -> per-channel sums
    selT_ref : (C, WC)        its transpose (per-channel stats -> lane layout)
    mask_ref : (R_pad, 1)     1.0 on valid rows, 0.0 on halo / pad rows
    out_ref  : (R_pad, WC)    output; halo/pad rows hold junk, wrapper drops them
    """
    WC = W * C
    inv_cnt = 1.0 / float(N * H * W)
    f32 = jnp.float32

    xp = xp_ref[...]
    mask = mask_ref[...]
    sel = sel_ref[...]
    selT = selT_ref[...]
    r_pad = xp.shape[0]

    def conv3x3(src, bw_ref):
        # One wide (R, WC) @ (WC, 3*WC) MXU matmul covers all three dy taps;
        # dx taps, input channels and the W zero-padding live inside the
        # banded weight.  Slice at 128-lane (tile-aligned) boundaries, then
        # resolve the vertical halo with sublane rolls on the XLU.  The roll
        # wrap-around rows land on halo / pad rows that are zero in `src`,
        # so no correction is needed.
        z = jnp.dot(src, bw_ref[...], preferred_element_type=f32)
        z0 = z[:, 0 * WC:1 * WC]
        z1 = z[:, 1 * WC:2 * WC]
        z2 = z[:, 2 * WC:3 * WC]
        up = pltpu.roll(z0, shift=1, axis=0)            # up[r]   = z0[r-1]
        dn = pltpu.roll(z2, shift=r_pad - 1, axis=0)    # dn[r]   = z2[r+1]
        return up + z1 + dn

    def batchnorm(y, g_wc, b_wc):
        # Training-mode BN, single pass over the valid (masked) rows.  The two
        # lane->channel folds share one (2, WC) @ (WC, C) matmul and the two
        # channel->lane broadcast-backs share one (2, C) @ (C, WC) matmul.
        ym = y * mask
        moments_wc = jnp.concatenate(
            [jnp.sum(ym, axis=0, keepdims=True),
             jnp.sum(ym * y, axis=0, keepdims=True)], axis=0)        # (2, WC)
        moments_c = jnp.dot(moments_wc, sel,
                            preferred_element_type=f32) * inv_cnt    # (2, C)
        mean_c = moments_c[0:1, :]
        var_c = moments_c[1:2, :] - mean_c * mean_c                  # biased
        inv_c = jax.lax.rsqrt(var_c + EPS)
        back_wc = jnp.dot(jnp.concatenate([mean_c, inv_c], axis=0), selT,
                          preferred_element_type=f32)                # (2, WC)
        scale = g_wc * back_wc[1:2, :]
        shift = b_wc - back_wc[0:1, :] * scale
        return y * scale + shift

    # conv1 -> BN1 -> ReLU.  The row mask finishes the ReLU branch AND zeroes
    # the halo/pad rows so they act as the zero padding seen by conv2 (and by
    # the roll wrap-around).
    y1 = batchnorm(conv3x3(xp, bw1_ref), g1_ref[...], bt1_ref[...])
    y1 = jnp.maximum(y1, 0.0) * mask

    # conv2 -> BN2, then the residual add (full-width, lane-dense store).
    y2 = batchnorm(conv3x3(y1, bw2_ref), g2_ref[...], bt2_ref[...])
    out_ref[...] = xp + y2


def _banded_weights_wide(w_hwio, W, C):
    """HWIO (3,3,Cin,Cout) -> (W*C, 3*W*C) banded weights, dy taps on wide N.

    Column block d holds B_d with
      B_d[wi*C+ci, wo*C+co] = w[d, wi-wo+1, ci, co] if |wi-wo| <= 1 else 0,
    i.e. dx taps + channels fold into the contraction dim and the W zero
    padding is realized by the band truncating at the edges.
    """
    wi = jnp.arange(W)[:, None]
    wo = jnp.arange(W)[None, :]
    diff = wi - wo
    valid = (jnp.abs(diff) <= 1).astype(jnp.float32)                 # (W, W)
    dx_idx = jnp.clip(diff + 1, 0, 2)                                # (W, W)
    blocks = w_hwio.astype(jnp.float32)[:, dx_idx, :, :]             # (3,W,W,C,C)
    blocks = blocks * valid[None, :, :, None, None]
    # (d, wi, wo, ci, co) -> (wi, ci, d, wo, co) -> (W*C, 3*W*C)
    return jnp.transpose(blocks, (1, 3, 0, 2, 4)).reshape(W * C, 3 * W * C)


@jax.jit
def residual_block(x_nchw, w1_hwio, b1, g1, bt1, w2_hwio, b2, g2, bt2):
    """x_nchw: (N, C, H, W) float32 -> (N, C, H, W) float32.

    b1/b2 (conv biases) are accepted for API fidelity with nn.Conv2d but not
    used: under training-mode BatchNorm the batch-mean subtraction cancels a
    per-channel conv bias exactly.
    """
    del b1, b2
    N, C, H, W = x_nchw.shape
    WC = W * C
    R = N * (H + 2)
    R_pad = -(-R // 8) * 8   # round rows up to a sublane multiple

    # NHWC, pad H only (W padding lives in the banded weights), then fold W*C
    # onto the lane axis -> lane-dense (R_pad, WC) slab.  Pad rows stay zero.
    # TODO(synk): fold this transpose/pad into the kernel at production sizes.
    x = jnp.transpose(x_nchw, (0, 2, 3, 1)).astype(jnp.float32)
    xp = jnp.pad(x, ((0, 0), (1, 1), (0, 0), (0, 0))).reshape(R, WC)
    xp = jnp.pad(xp, ((0, R_pad - R), (0, 0)))

    bw1 = _banded_weights_wide(w1_hwio, W, C)
    bw2 = _banded_weights_wide(w2_hwio, W, C)

    sel = jnp.tile(jnp.eye(C, dtype=jnp.float32), (W, 1))           # (WC, C)
    selT = jnp.transpose(sel)                                       # (C, WC)

    ridx = jnp.arange(R_pad)
    rmod = ridx % (H + 2)
    mask = ((ridx < R) & (rmod >= 1) & (rmod <= H)).astype(jnp.float32)
    mask = mask.reshape(R_pad, 1)

    def tile_c(v):                                                  # (C,)->(1,WC)
        return jnp.tile(v.astype(jnp.float32).reshape(1, C), (1, W))

    vmem = pl.BlockSpec(memory_space=pltpu.MemorySpace.VMEM)
    kernel = functools.partial(_residual_block_kernel, N=N, H=H, W=W, C=C)
    out_flat = pl.pallas_call(
        kernel,
        out_shape=jax.ShapeDtypeStruct((R_pad, WC), jnp.float32),
        in_specs=[vmem] * 10,
        out_specs=vmem,
    )(xp, bw1, bw2, tile_c(g1), tile_c(bt1), tile_c(g2), tile_c(bt2),
      sel, selT, mask)

    out = out_flat[:R].reshape(N, H + 2, W, C)[:, 1:H + 1]          # drop halo
    return jnp.transpose(out, (0, 3, 1, 2))                         # back to NCHW


def residual_block_ref(x_nchw, w1_hwio, b1, g1, bt1, w2_hwio, b2, g2, bt2):
    """Pure-JAX reference (training-mode BN, conv bias included)."""
    x = jnp.transpose(x_nchw, (0, 2, 3, 1))

    def conv(y, w, b):
        return jax.lax.conv_general_dilated(
            y, w, window_strides=(1, 1), padding='SAME',
            dimension_numbers=('NHWC', 'HWIO', 'NHWC')) + b

    def bn(y, g, bt):
        mean = jnp.mean(y, axis=(0, 1, 2), keepdims=True)
        var = jnp.mean((y - mean) ** 2, axis=(0, 1, 2), keepdims=True)
        return (y - mean) * jax.lax.rsqrt(var + EPS) * g + bt

    y = jnp.maximum(bn(conv(x, w1_hwio, b1), g1, bt1), 0.0)
    y = bn(conv(y, w2_hwio, b2), g2, bt2)
    return jnp.transpose(x + y, (0, 3, 1, 2))


if __name__ == "__main__":
    # Small shapes consistent with the module: batch=2, channels=8, spatial=16
    # (W*C = 128 keeps the folded lane dim exactly one vreg wide).
    N, C, H, W = 2, 8, 16, 16
    key = jax.random.PRNGKey(0)
    kx, kw1, kb1, kg1, kt1, kw2, kb2, kg2, kt2 = jax.random.split(key, 9)

    x = jax.random.normal(kx, (N, C, H, W), jnp.float32)

    # PyTorch conv weight (Cout,Cin,3,3) kept here directly as HWIO (3,3,Cin,Cout).
    w1 = 0.1 * jax.random.normal(kw1, (3, 3, C, C), jnp.float32)
    b1 = 0.1 * jax.random.normal(kb1, (C,), jnp.float32)
    g1 = 1.0 + 0.1 * jax.random.normal(kg1, (C,), jnp.float32)
    bt1 = 0.1 * jax.random.normal(kt1, (C,), jnp.float32)
    w2 = 0.1 * jax.random.normal(kw2, (3, 3, C, C), jnp.float32)
    b2 = 0.1 * jax.random.normal(kb2, (C,), jnp.float32)
    g2 = 1.0 + 0.1 * jax.random.normal(kg2, (C,), jnp.float32)
    bt2 = 0.1 * jax.random.normal(kt2, (C,), jnp.float32)

    out = residual_block(x, w1, b1, g1, bt1, w2, b2, g2, bt2)
    out = jax.block_until_ready(out)

    ref = residual_block_ref(x, w1, b1, g1, bt1, w2, b2, g2, bt2)
    assert out.shape == (N, C, H, W) and out.dtype == jnp.float32
    assert jnp.allclose(out, ref, rtol=1e-4, atol=2e-4), \
        float(jnp.max(jnp.abs(out - ref)))

    print("KERNEL_OK")
</pallas_src>

<mosaic_0001>
module attributes {stable_mosaic.version = 11 : i64} {
  func.func @_residual_block_kernel(%arg0: memref<40x128xf32, #tpu.memory_space<vmem>>, %arg1: memref<128x384xf32, #tpu.memory_space<vmem>>, %arg2: memref<128x384xf32, #tpu.memory_space<vmem>>, %arg3: memref<1x128xf32, #tpu.memory_space<vmem>>, %arg4: memref<1x128xf32, #tpu.memory_space<vmem>>, %arg5: memref<1x128xf32, #tpu.memory_space<vmem>>, %arg6: memref<1x128xf32, #tpu.memory_space<vmem>>, %arg7: memref<128x8xf32, #tpu.memory_space<vmem>>, %arg8: memref<8x128xf32, #tpu.memory_space<vmem>>, %arg9: memref<40x1xf32, #tpu.memory_space<vmem>>, %arg10: memref<40x128xf32, #tpu.memory_space<vmem>>) attributes {dimension_semantics = [], scalar_prefetch = 0 : i64, scratch_operands = 0 : i64, tpu.core_type = #tpu.core_type<tc>} {
    %c0 = arith.constant 0 : index
    %c0_0 = arith.constant 0 : index
    %0 = vector.load %arg0[%c0, %c0_0] : memref<40x128xf32, #tpu.memory_space<vmem>>, vector<40x128xf32>
    %c0_1 = arith.constant 0 : index
    %c0_2 = arith.constant 0 : index
    %1 = vector.load %arg9[%c0_1, %c0_2] : memref<40x1xf32, #tpu.memory_space<vmem>>, vector<40x1xf32>
    %c0_3 = arith.constant 0 : index
    %c0_4 = arith.constant 0 : index
    %2 = vector.load %arg7[%c0_3, %c0_4] : memref<128x8xf32, #tpu.memory_space<vmem>>, vector<128x8xf32>
    %c0_5 = arith.constant 0 : index
    %c0_6 = arith.constant 0 : index
    %3 = vector.load %arg8[%c0_5, %c0_6] : memref<8x128xf32, #tpu.memory_space<vmem>>, vector<8x128xf32>
    %c0_7 = arith.constant 0 : index
    %c0_8 = arith.constant 0 : index
    %4 = vector.load %arg1[%c0_7, %c0_8] : memref<128x384xf32, #tpu.memory_space<vmem>>, vector<128x384xf32>
    %cst = arith.constant dense<0.000000e+00> : vector<40x384xf32>
    %5 = tpu.matmul %0, %4, %cst {dimension_numbers = #tpu.dot_dimension_numbers<[1], [0], [0], [1], [0, 0, 1, 1], [], []>} : vector<40x128xf32>, vector<128x384xf32>, vector<40x384xf32> -> vector<40x384xf32>
    %6 = vector.extract_strided_slice %5 {offsets = [0, 0], sizes = [40, 128], strides = [1, 1]} : vector<40x384xf32> to vector<40x128xf32>
    %7 = vector.extract_strided_slice %5 {offsets = [0, 128], sizes = [40, 128], strides = [1, 1]} : vector<40x384xf32> to vector<40x128xf32>
    %8 = vector.extract_strided_slice %5 {offsets = [0, 256], sizes = [40, 128], strides = [1, 1]} : vector<40x384xf32> to vector<40x128xf32>
    %c1_i32 = arith.constant 1 : i32
    %9 = tpu.dynamic_rotate %6 by %c1_i32 dim 0 : vector<40x128xf32>, i32 -> vector<40x128xf32>
    %c39_i32 = arith.constant 39 : i32
    %10 = tpu.dynamic_rotate %8 by %c39_i32 dim 0 : vector<40x128xf32>, i32 -> vector<40x128xf32>
    %11 = arith.addf %9, %7 : vector<40x128xf32>
    %12 = arith.addf %11, %10 : vector<40x128xf32>
    %c0_9 = arith.constant 0 : index
    %c0_10 = arith.constant 0 : index
    %13 = vector.load %arg3[%c0_9, %c0_10] : memref<1x128xf32, #tpu.memory_space<vmem>>, vector<1x128xf32>
    %c0_11 = arith.constant 0 : index
    %c0_12 = arith.constant 0 : index
    %14 = vector.load %arg4[%c0_11, %c0_12] : memref<1x128xf32, #tpu.memory_space<vmem>>, vector<1x128xf32>
    %15 = vector.broadcast %1 : vector<40x1xf32> to vector<40x128xf32>
    %16 = arith.mulf %12, %15 : vector<40x128xf32>
    %cst_13 = arith.constant dense<0.000000e+00> : vector<128xf32>
    %17 = vector.multi_reduction <add>, %16, %cst_13 [0] : vector<40x128xf32> to vector<128xf32>
    %18 = vector.shape_cast %17 : vector<128xf32> to vector<1x128xf32>
    %19 = arith.mulf %16, %12 : vector<40x128xf32>
    %cst_14 = arith.constant dense<0.000000e+00> : vector<128xf32>
    %20 = vector.multi_reduction <add>, %19, %cst_14 [0] : vector<40x128xf32> to vector<128xf32>
    %21 = vector.shape_cast %20 : vector<128xf32> to vector<1x128xf32>
    %22 = tpu.concatenate %18, %21 in 0 : vector<1x128xf32>, vector<1x128xf32> -> vector<2x128xf32>
    %cst_15 = arith.constant dense<0.000000e+00> : vector<2x8xf32>
    %23 = tpu.matmul %22, %2, %cst_15 {dimension_numbers = #tpu.dot_dimension_numbers<[1], [0], [0], [1], [0, 0, 1, 1], [], []>} : vector<2x128xf32>, vector<128x8xf32>, vector<2x8xf32> -> vector<2x8xf32>
    %cst_16 = arith.constant 0.001953125 : f32
    %24 = vector.broadcast %cst_16 : f32 to vector<2x8xf32>
    %25 = arith.mulf %23, %24 : vector<2x8xf32>
    %26 = vector.extract_strided_slice %25 {offsets = [0, 0], sizes = [1, 8], strides = [1, 1]} : vector<2x8xf32> to vector<1x8xf32>
    %27 = vector.extract_strided_slice %25 {offsets = [1, 0], sizes = [1, 8], strides = [1, 1]} : vector<2x8xf32> to vector<1x8xf32>
    %28 = arith.mulf %26, %26 : vector<1x8xf32>
    %29 = arith.subf %27, %28 : vector<1x8xf32>
    %cst_17 = arith.constant 9.99999974E-6 : f32
    %30 = vector.broadcast %cst_17 : f32 to vector<1x8xf32>
    %31 = arith.addf %29, %30 : vector<1x8xf32>
    %32 = math.rsqrt %31 : vector<1x8xf32>
    %33 = tpu.concatenate %26, %32 in 0 : vector<1x8xf32>, vector<1x8xf32> -> vector<2x8xf32>
    %cst_18 = arith.constant dense<0.000000e+00> : vector<2x128xf32>
    %34 = tpu.matmul %33, %3, %cst_18 {dimension_numbers = #tpu.dot_dimension_numbers<[1], [0], [0], [1], [0, 0, 1, 1], [], []>} : vector<2x8xf32>, vector<8x128xf32>, vector<2x128xf32> -> vector<2x128xf32>
    %35 = vector.extract_strided_slice %34 {offsets = [1, 0], sizes = [1, 128], strides = [1, 1]} : vector<2x128xf32> to vector<1x128xf32>
    %36 = arith.mulf %13, %35 : vector<1x128xf32>
    %37 = vector.extract_strided_slice %34 {offsets = [0, 0], sizes = [1, 128], strides = [1, 1]} : vector<2x128xf32> to vector<1x128xf32>
    %38 = arith.mulf %37, %36 : vector<1x128xf32>
    %39 = arith.subf %14, %38 : vector<1x128xf32>
    %40 = vector.broadcast %36 : vector<1x128xf32> to vector<40x128xf32>
    %41 = arith.mulf %12, %40 : vector<40x128xf32>
    %42 = vector.broadcast %39 : vector<1x128xf32> to vector<40x128xf32>
    %43 = arith.addf %41, %42 : vector<40x128xf32>
    %cst_19 = arith.constant 0.000000e+00 : f32
    %44 = vector.broadcast %cst_19 : f32 to vector<40x128xf32>
    %45 = arith.maximumf %43, %44 : vector<40x128xf32>
    %46 = vector.broadcast %1 : vector<40x1xf32> to vector<40x128xf32>
    %47 = arith.mulf %45, %46 : vector<40x128xf32>
    %c0_20 = arith.constant 0 : index
    %c0_21 = arith.constant 0 : index
    %48 = vector.load %arg2[%c0_20, %c0_21] : memref<128x384xf32, #tpu.memory_space<vmem>>, vector<128x384xf32>
    %cst_22 = arith.constant dense<0.000000e+00> : vector<40x384xf32>
    %49 = tpu.matmul %47, %48, %cst_22 {dimension_numbers = #tpu.dot_dimension_numbers<[1], [0], [0], [1], [0, 0, 1, 1], [], []>} : vector<40x128xf32>, vector<128x384xf32>, vector<40x384xf32> -> vector<40x384xf32>
    %50 = vector.extract_strided_slice %49 {offsets = [0, 0], sizes = [40, 128], strides = [1, 1]} : vector<40x384xf32> to vector<40x128xf32>
    %51 = vector.extract_strided_slice %49 {offsets = [0, 128], sizes = [40, 128], strides = [1, 1]} : vector<40x384xf32> to vector<40x128xf32>
    %52 = vector.extract_strided_slice %49 {offsets = [0, 256], sizes = [40, 128], strides = [1, 1]} : vector<40x384xf32> to vector<40x128xf32>
    %c1_i32_23 = arith.constant 1 : i32
    %53 = tpu.dynamic_rotate %50 by %c1_i32_23 dim 0 : vector<40x128xf32>, i32 -> vector<40x128xf32>
    %c39_i32_24 = arith.constant 39 : i32
    %54 = tpu.dynamic_rotate %52 by %c39_i32_24 dim 0 : vector<40x128xf32>, i32 -> vector<40x128xf32>
    %55 = arith.addf %53, %51 : vector<40x128xf32>
    %56 = arith.addf %55, %54 : vector<40x128xf32>
    %c0_25 = arith.constant 0 : index
    %c0_26 = arith.constant 0 : index
    %57 = vector.load %arg5[%c0_25, %c0_26] : memref<1x128xf32, #tpu.memory_space<vmem>>, vector<1x128xf32>
    %c0_27 = arith.constant 0 : index
    %c0_28 = arith.constant 0 : index
    %58 = vector.load %arg6[%c0_27, %c0_28] : memref<1x128xf32, #tpu.memory_space<vmem>>, vector<1x128xf32>
    %59 = vector.broadcast %1 : vector<40x1xf32> to vector<40x128xf32>
    %60 = arith.mulf %56, %59 : vector<40x128xf32>
    %cst_29 = arith.constant dense<0.000000e+00> : vector<128xf32>
    %61 = vector.multi_reduction <add>, %60, %cst_29 [0] : vector<40x128xf32> to vector<128xf32>
    %62 = vector.shape_cast %61 : vector<128xf32> to vector<1x128xf32>
    %63 = arith.mulf %60, %56 : vector<40x128xf32>
    %cst_30 = arith.constant dense<0.000000e+00> : vector<128xf32>
    %64 = vector.multi_reduction <add>, %63, %cst_30 [0] : vector<40x128xf32> to vector<128xf32>
    %65 = vector.shape_cast %64 : vector<128xf32> to vector<1x128xf32>
    %66 = tpu.concatenate %62, %65 in 0 : vector<1x128xf32>, vector<1x128xf32> -> vector<2x128xf32>
    %cst_31 = arith.constant dense<0.000000e+00> : vector<2x8xf32>
    %67 = tpu.matmul %66, %2, %cst_31 {dimension_numbers = #tpu.dot_dimension_numbers<[1], [0], [0], [1], [0, 0, 1, 1], [], []>} : vector<2x128xf32>, vector<128x8xf32>, vector<2x8xf32> -> vector<2x8xf32>
    %cst_32 = arith.constant 0.001953125 : f32
    %68 = vector.broadcast %cst_32 : f32 to vector<2x8xf32>
    %69 = arith.mulf %67, %68 : vector<2x8xf32>
    %70 = vector.extract_strided_slice %69 {offsets = [0, 0], sizes = [1, 8], strides = [1, 1]} : vector<2x8xf32> to vector<1x8xf32>
    %71 = vector.extract_strided_slice %69 {offsets = [1, 0], sizes = [1, 8], strides = [1, 1]} : vector<2x8xf32> to vector<1x8xf32>
    %72 = arith.mulf %70, %70 : vector<1x8xf32>
    %73 = arith.subf %71, %72 : vector<1x8xf32>
    %cst_33 = arith.constant 9.99999974E-6 : f32
    %74 = vector.broadcast %cst_33 : f32 to vector<1x8xf32>
    %75 = arith.addf %73, %74 : vector<1x8xf32>
    %76 = math.rsqrt %75 : vector<1x8xf32>
    %77 = tpu.concatenate %70, %76 in 0 : vector<1x8xf32>, vector<1x8xf32> -> vector<2x8xf32>
    %cst_34 = arith.constant dense<0.000000e+00> : vector<2x128xf32>
    %78 = tpu.matmul %77, %3, %cst_34 {dimension_numbers = #tpu.dot_dimension_numbers<[1], [0], [0], [1], [0, 0, 1, 1], [], []>} : vector<2x8xf32>, vector<8x128xf32>, vector<2x128xf32> -> vector<2x128xf32>
    %79 = vector.extract_strided_slice %78 {offsets = [1, 0], sizes = [1, 128], strides = [1, 1]} : vector<2x128xf32> to vector<1x128xf32>
    %80 = arith.mulf %57, %79 : vector<1x128xf32>
    %81 = vector.extract_strided_slice %78 {offsets = [0, 0], sizes = [1, 128], strides = [1, 1]} : vector<2x128xf32> to vector<1x128xf32>
    %82 = arith.mulf %81, %80 : vector<1x128xf32>
    %83 = arith.subf %58, %82 : vector<1x128xf32>
    %84 = vector.broadcast %80 : vector<1x128xf32> to vector<40x128xf32>
    %85 = arith.mulf %56, %84 : vector<40x128xf32>
    %86 = vector.broadcast %83 : vector<1x128xf32> to vector<40x128xf32>
    %87 = arith.addf %85, %86 : vector<40x128xf32>
    %88 = arith.addf %0, %87 : vector<40x128xf32>
    %c0_35 = arith.constant 0 : index
    %c0_36 = arith.constant 0 : index
    %89 = vector.load %arg10[%c0_35, %c0_36] : memref<40x128xf32, #tpu.memory_space<vmem>>, vector<40x128xf32>
    tpu.vector_store %arg10[%c0_35, %c0_36], %88 {strides = array<i32>} : memref<40x128xf32, #tpu.memory_space<vmem>>, vector<40x128xf32>,
    return
  }
}

</mosaic_0001>

<bundles_post_ra>
// kernel: tile.25
= control target key start
LH: loop header
LB: loop body
LE: loop exit
PB: predicated region body
PF: predicated region fallthrough
CT: control target
= control target key end

     0   :  { %vm6_vm0 = vcmask 1043458   ;;  %vm10_vm1 = vcmask 1045508   ;;  %vm14_vm2 = vcmask 1047558   ;;  %s19_s6 = smov 3  ;;  %s22_s7 = smov 12  ;;  %vm16_vm3 = vcmask 64512   ;;  %s736_s0 = inlined_call_operand.vmem [shape: f32[16,8,8], index: 0, kind: input, shape index: {}]   ;;  %s737_s1 = inlined_call_operand.vmem [shape: f32[128,8], index: 1, kind: output, shape index: {}]  }
   0x1   :  { %v348_v0 = vld [vmem:[%s736_s0 + $0xf] ss:$16 sm:%s19_s6]   ;;  %s27_s12 = smov 48  ;;  %s32_s13 = smov 192  ;;  %vm38_vm4 = vcmask 1048512   ;;  %vm60_vm5 = vcmask 982912  }
   0x2   :  { %v349_v1 = vld [vmem:[%s736_s0 + $0xf] ss:$16 sm:%s22_s7]   ;;  %s63_s18 = smov 3  ;;  %s66_s21 = smov 12  ;;  %vm82_vm6 = vcmask 917312   ;;  %vm104_vm7 = vcmask 851712  }
   0x3   :  { %v25_v2 = vsel %vm6_vm0, %v349_v1, %v348_v0  ;;  %v350_v3 = vld [vmem:[%s736_s0 + $0xf] ss:$16 sm:%s27_s12]   ;;  %v356_v6 = vld [vmem:[%s736_s0 + $0xd] ss:$16 sm:%s63_s18]   ;;  %s71_s22 = smov 48  ;;  %s76_s27 = smov 192 }
   0x4   :  { %v351_v4 = vld [vmem:[%s736_s0 + $0xf] ss:$16 sm:%s32_s13]   ;;  %v30_v5 = vsel %vm10_vm1, %v350_v3, %v25_v2  ;;  %v357_v8 = vld [vmem:[%s736_s0 + $0xd] ss:$16 sm:%s66_s21]   ;;  %s423_s28 = smov 120   ;;  %s41_s2 = smov 3 }
   0x5   :  { %v35_v7 = vsel %vm14_vm2, %v351_v4, %v30_v5  ;;  %v358_v9 = vld [vmem:[%s736_s0 + $0xd] ss:$16 sm:%s71_s22]   ;;  %v69_v10 = vsel %vm6_vm0, %v357_v8, %v356_v6  ;;  %s44_s3 = smov 12  ;;  %v352_v13 = vld [vmem:[%s736_s0 + $0xe] ss:$16 sm:%s41_s2]   ;;  %s49_s8 = smov 48 }
   0x6   :  { %36 = vrot.lane.b32.xlu0 %v35_v7, %s423_s28  ;;  %v359_v11 = vld [vmem:[%s736_s0 + $0xd] ss:$16 sm:%s76_s27]   ;;  %v74_v12 = vsel %vm10_vm1, %v358_v9, %v69_v10  ;;  %s54_s9 = smov 192  ;;  %s85_s14 = smov 3  ;;  %vm126_vm8 = vcmask 786112   ;;  %vm148_vm9 = vcmask 720512  }
   0x7   :  { %v353_v14 = vld [vmem:[%s736_s0 + $0xe] ss:$16 sm:%s44_s3]   ;;  %v79_v15 = vsel %vm14_vm2, %v359_v11, %v74_v12  ;;  %s424_s15 = smov 104   ;;  %v360_v20 = vld [vmem:[%s736_s0 + $0xc] ss:$16 sm:%s85_s14]   ;;  %s88_s18 = smov 12 }
   0x8   :  { %v47_v16 = vsel %vm6_vm0, %v353_v14, %v352_v13  ;;  %v354_v17 = vld [vmem:[%s736_s0 + $0xe] ss:$16 sm:%s49_s8]   ;;  %80 = vrot.lane.b32.xlu1 %v79_v15, %s424_s15  ;;  %s93_s19 = smov 48  ;;  %s98_s24 = smov 192  ;;  %vm170_vm10 = vcmask 654912   ;;  %vm192_vm11 = vcmask 589312  }
   0x9   :  { %v355_v18 = vld [vmem:[%s736_s0 + $0xe] ss:$16 sm:%s54_s9]   ;;  %v52_v19 = vsel %vm10_vm1, %v354_v17, %v47_v16  ;;  %v361_v22 = vld [vmem:[%s736_s0 + $0xc] ss:$16 sm:%s88_s18]   ;;  %s425_s25 = smov 112   ;;  %s107_s28 = smov 3 }
   0xa   :  { %v57_v21 = vsel %vm14_vm2, %v355_v18, %v52_v19  ;;  %v362_v23 = vld [vmem:[%s736_s0 + $0xc] ss:$16 sm:%s93_s19]   ;;  %v91_v24 = vsel %vm6_vm0, %v361_v22, %v360_v20  ;;  %s110_s29 = smov 12  ;;  %v364_v27 = vld [vmem:[%s736_s0 + $0xb] ss:$16 sm:%s107_s28]   ;;  %s115_s5 = smov 48 }
   0xb   :  { %58 = vrot.lane.b32.xlu0 %v57_v21, %s425_s25  ;;  %v363_v25 = vld [vmem:[%s736_s0 + $0xc] ss:$16 sm:%s98_s24]   ;;  %v96_v26 = vsel %vm10_vm1, %v362_v23, %v91_v24  ;;  %s120_s6 = smov 192  ;;  %s129_s11 = smov 3  ;;  %vm214_vm12 = vcmask 523712   ;;  %vm236_vm13 = vcmask 458112  }
   0xc   :  { %v365_v28 = vld [vmem:[%s736_s0 + $0xb] ss:$16 sm:%s110_s29]   ;;  %v101_v29 = vsel %vm14_vm2, %v363_v25, %v96_v26  ;;  %s426_s12 = smov 96   ;;  %v368_v34 = vld [vmem:[%s736_s0 + $0xa] ss:$16 sm:%s129_s11]   ;;  %s132_s15 = smov 12 }
   0xd   :  { %v113_v30 = vsel %vm6_vm0, %v365_v28, %v364_v27  ;;  %v366_v31 = vld [vmem:[%s736_s0 + $0xb] ss:$16 sm:%s115_s5]   ;;  %102 = vrot.lane.b32.xlu1 %v101_v29, %s426_s12  ;;  %s137_s16 = smov 48  ;;  %s142_s21 = smov 192  ;;  %vm258_vm14 = vcmask 392512   ;;  %vm280_vm15 = vcmask 326912  }
   0xe   :  { %v367_v32 = vld [vmem:[%s736_s0 + $0xb] ss:$16 sm:%s120_s6]   ;;  %v118_v33 = vsel %vm10_vm1, %v366_v31, %v113_v30  ;;  %v369_v36 = vld [vmem:[%s736_s0 + $0xa] ss:$16 sm:%s132_s15]   ;;  %s427_s22 = smov 88   ;;  %s151_s25 = smov 3 }
   0xf   :  { %v123_v35 = vsel %vm14_vm2, %v367_v32, %v118_v33  ;;  %v370_v37 = vld [vmem:[%s736_s0 + $0xa] ss:$16 sm:%s137_s16]   ;;  %v135_v38 = vsel %vm6_vm0, %v369_v36, %v368_v34  ;;  %s154_s26 = smov 12  ;;  %v372_v41 = vld [vmem:[%s736_s0 + $0x9] ss:$16 sm:%s151_s25]   ;;  %s159_s2 = smov 48 }
  0x10   :  { %124 = vrot.lane.b32.xlu0 %v123_v35, %s427_s22  ;;  %v371_v39 = vld [vmem:[%s736_s0 + $0xa] ss:$16 sm:%s142_s21]   ;;  %v140_v40 = vsel %vm10_vm1, %v370_v37, %v135_v38  ;;  %s164_s3 = smov 192  ;;  %s173_s8 = smov 3 }
  0x11   :  { %v373_v42 = vld [vmem:[%s736_s0 + $0x9] ss:$16 sm:%s154_s26]   ;;  %v145_v43 = vsel %vm14_vm2, %v371_v39, %v140_v40  ;;  %s428_s9 = smov 80   ;;  %v376_v48 = vld [vmem:[%s736_s0 + $0x8] ss:$16 sm:%s173_s8]   ;;  %s176_s12 = smov 12 }
  0x12   :  { %v157_v44 = vsel %vm6_vm0, %v373_v42, %v372_v41  ;;  %v374_v45 = vld [vmem:[%s736_s0 + $0x9] ss:$16 sm:%s159_s2]   ;;  %146 = vrot.lane.b32.xlu1 %v145_v43, %s428_s9  ;;  %s181_s13 = smov 48  ;;  %s186_s18 = smov 192 }
  0x13   :  { %v375_v46 = vld [vmem:[%s736_s0 + $0x9] ss:$16 sm:%s164_s3]   ;;  %v162_v47 = vsel %vm10_vm1, %v374_v45, %v157_v44  ;;  %v377_v50 = vld [vmem:[%s736_s0 + $0x8] ss:$16 sm:%s176_s12]   ;;  %s429_s19 = smov 72   ;;  %s195_s22 = smov 3 }
  0x14   :  { %v167_v49 = vsel %vm14_vm2, %v375_v46, %v162_v47  ;;  %v378_v51 = vld [vmem:[%s736_s0 + $0x8] ss:$16 sm:%s181_s13]   ;;  %v179_v52 = vsel %vm6_vm0, %v377_v50, %v376_v48  ;;  %s198_s23 = smov 12  ;;  %v380_v55 = vld [vmem:[%s736_s0 + $0x7] ss:$16 sm:%s195_s22]   ;;  %s203_s28 = smov 48 }
  0x15   :  { %168 = vrot.lane.b32.xlu0 %v167_v49, %s429_s19  ;;  %v379_v53 = vld [vmem:[%s736_s0 + $0x8] ss:$16 sm:%s186_s18]   ;;  %v184_v54 = vsel %vm10_vm1, %v378_v51, %v179_v52  ;;  %s208_s29 = smov 192  ;;  %s217_s5 = smov 3 }
  0x16   :  { %v381_v56 = vld [vmem:[%s736_s0 + $0x7] ss:$16 sm:%s198_s23]   ;;  %v189_v57 = vsel %vm14_vm2, %v379_v53, %v184_v54  ;;  %s430_s6 = smov 64   ;;  %v384_v62 = vld [vmem:[%s736_s0 + $0x6] ss:$16 sm:%s217_s5]   ;;  %s220_s9 = smov 12 }
  0x17   :  { %v201_v58 = vsel %vm6_vm0, %v381_v56, %v380_v55  ;;  %v382_v59 = vld [vmem:[%s736_s0 + $0x7] ss:$16 sm:%s203_s28]   ;;  %190 = vrot.lane.b32.xlu1 %v189_v57, %s430_s6  ;;  %s225_s10 = smov 48  ;;  %s230_s15 = smov 192 }
  0x18   :  { %v383_v60 = vld [vmem:[%s736_s0 + $0x7] ss:$16 sm:%s208_s29]   ;;  %v206_v61 = vsel %vm10_vm1, %v382_v59, %v201_v58  ;;  %v385_v0 = vld [vmem:[%s736_s0 + $0x6] ss:$16 sm:%s220_s9]   ;;  %s431_s16 = smov 56   ;;  %s239_s19 = smov 3 }
  0x19   :  { %v211_v63 = vsel %vm14_vm2, %v383_v60, %v206_v61  ;;  %v386_v1 = vld [vmem:[%s736_s0 + $0x6] ss:$16 sm:%s225_s10]   ;;  %v223_v2 = vsel %vm6_vm0, %v385_v0, %v384_v62  ;;  %s242_s20 = smov 12  ;;  %v388_v5 = vld [vmem:[%s736_s0 + $0x5] ss:$16 sm:%s239_s19]   ;;  %s247_s25 = smov 48 }
  0x1a   :  { %212 = vrot.lane.b32.xlu0 %v211_v63, %s431_s16  ;;  %v387_v3 = vld [vmem:[%s736_s0 + $0x6] ss:$16 sm:%s230_s15]   ;;  %v228_v4 = vsel %vm10_vm1, %v386_v1, %v223_v2  ;;  %s252_s26 = smov 192  ;;  %s261_s2 = smov 3 }
  0x1b   :  { %v389_v6 = vld [vmem:[%s736_s0 + $0x5] ss:$16 sm:%s242_s20]   ;;  %v233_v7 = vsel %vm14_vm2, %v387_v3, %v228_v4  ;;  %s432_s3 = smov 48   ;;  %v392_v12 = vld [vmem:[%s736_s0 + $0x4] ss:$16 sm:%s261_s2]   ;;  %s264_s6 = smov 12 }
  0x1c   :  { %v245_v8 = vsel %vm6_vm0, %v389_v6, %v388_v5  ;;  %v390_v9 = vld [vmem:[%s736_s0 + $0x5] ss:$16 sm:%s247_s25]   ;;  %234 = vrot.lane.b32.xlu1 %v233_v7, %s432_s3  ;;  %s269_s7 = smov 48  ;;  %s274_s12 = smov 192 }
  0x1d   :  { %v391_v10 = vld [vmem:[%s736_s0 + $0x5] ss:$16 sm:%s252_s26]   ;;  %v250_v11 = vsel %vm10_vm1, %v390_v9, %v245_v8  ;;  %v393_v14 = vld [vmem:[%s736_s0 + $0x4] ss:$16 sm:%s264_s6]   ;;  %s433_s13 = smov 40   ;;  %s283_s16 = smov 3 }
  0x1e   :  { %v255_v13 = vsel %vm14_vm2, %v391_v10, %v250_v11  ;;  %v394_v15 = vld [vmem:[%s736_s0 + $0x4] ss:$16 sm:%s269_s7]   ;;  %v267_v16 = vsel %vm6_vm0, %v393_v14, %v392_v12  ;;  %s286_s17 = smov 12  ;;  %v396_v19 = vld [vmem:[%s736_s0 + $0x3] ss:$16 sm:%s283_s16]   ;;  %s291_s22 = smov 48 }
  0x1f   :  { %256 = vrot.lane.b32.xlu0 %v255_v13, %s433_s13  ;;  %v395_v17 = vld [vmem:[%s736_s0 + $0x4] ss:$16 sm:%s274_s12]   ;;  %v272_v18 = vsel %vm10_vm1, %v394_v15, %v267_v16  ;;  %s296_s23 = smov 192  ;;  %s305_s28 = smov 3 }
  0x20   :  { %v397_v20 = vld [vmem:[%s736_s0 + $0x3] ss:$16 sm:%s286_s17]   ;;  %v277_v21 = vsel %vm14_vm2, %v395_v17, %v272_v18  ;;  %s434_s29 = smov 32   ;;  %v400_v26 = vld [vmem:[%s736_s0 + $0x2] ss:$16 sm:%s305_s28]   ;;  %s308_s3 = smov 12 }
  0x21   :  { %v289_v22 = vsel %vm6_vm0, %v397_v20, %v396_v19  ;;  %v398_v23 = vld [vmem:[%s736_s0 + $0x3] ss:$16 sm:%s291_s22]   ;;  %278 = vrot.lane.b32.xlu1 %v277_v21, %s434_s29  ;;  %s313_s4 = smov 48  ;;  %s318_s9 = smov 192 }
  0x22   :  { %v399_v24 = vld [vmem:[%s736_s0 + $0x3] ss:$16 sm:%s296_s23]   ;;  %v294_v25 = vsel %vm10_vm1, %v398_v23, %v289_v22  ;;  %v401_v28 = vld [vmem:[%s736_s0 + $0x2] ss:$16 sm:%s308_s3]   ;;  %s435_s10 = smov 24   ;;  %s327_s13 = smov 3 }
  0x23   :  { %v299_v27 = vsel %vm14_vm2, %v399_v24, %v294_v25  ;;  %v402_v29 = vld [vmem:[%s736_s0 + $0x2] ss:$16 sm:%s313_s4]   ;;  %v311_v30 = vsel %vm6_vm0, %v401_v28, %v400_v26  ;;  %s330_s14 = smov 12  ;;  %v404_v33 = vld [vmem:[%s736_s0 + $0x1] ss:$16 sm:%s327_s13]   ;;  %s335_s19 = smov 48 }
  0x24   :  { %300 = vrot.lane.b32.xlu0 %v299_v27, %s435_s10  ;;  %v403_v31 = vld [vmem:[%s736_s0 + $0x2] ss:$16 sm:%s318_s9]   ;;  %v316_v32 = vsel %vm10_vm1, %v402_v29, %v311_v30  ;;  %s340_s20 = smov 192  ;;  %s2_s25 = smov 3 }
  0x25   :  { %v405_v34 = vld [vmem:[%s736_s0 + $0x1] ss:$16 sm:%s330_s14]   ;;  %v321_v35 = vsel %vm14_vm2, %v403_v31, %v316_v32  ;;  %s436_s26 = smov 16   ;;  %s4_s27 = smov 12  ;;  %v3_v40 = vld [vmem:[%s736_s0] ss:$16 sm:%s2_s25]  }
  0x26   :  { %v333_v36 = vsel %vm6_vm0, %v405_v34, %v404_v33  ;;  %v406_v37 = vld [vmem:[%s736_s0 + $0x1] ss:$16 sm:%s335_s19]   ;;  %322 = vrot.lane.b32.xlu1 %v321_v35, %s436_s26  ;;  %s8_s28 = smov 48  ;;  %s12_s2 = smov 192 }
  0x27   :  { %v407_v38 = vld [vmem:[%s736_s0 + $0x1] ss:$16 sm:%s340_s20]   ;;  %v338_v39 = vsel %vm10_vm1, %v406_v37, %v333_v36  ;;  %v5_v42 = vld [vmem:[%s736_s0] ss:$16 sm:%s4_s27]   ;;  %s437_s7 = smov 8  }
  0x28   :  { %v343_v41 = vsel %vm14_vm2, %v407_v38, %v338_v39  ;;  %v9_v43 = vld [vmem:[%s736_s0] ss:$16 sm:%s8_s28]   ;;  %v7_v44 = vsel %vm6_vm0, %v5_v42, %v3_v40  ;;  %vm302_vm0 = vcmask 261312  }
  0x29   :  { %344 = vrot.lane.b32.xlu0 %v343_v41, %s437_s7  ;;  %v13_v45 = vld [vmem:[%s736_s0] ss:$16 sm:%s12_s2]   ;;  %v11_v46 = vsel %vm10_vm1, %v9_v43, %v7_v44  ;;  %vm324_vm1 = vcmask 195712  }
  0x2a   :  { %v15_v47 = vsel %vm14_vm2, %v13_v45, %v11_v46  ;;  %vm346_vm2 = vcmask 130112  }
  0x2b   :  { %17 = vst.msk [vmem:[%s737_s1] sm:$0xff] %vm16_vm3, %v15_v47  }
  0x78   :  { %v37_v48 = vpop.permute.xlu0 %36  }
  0x79   :  { %39 = vst.msk [vmem:[%s737_s1] sm:$0xff] %vm38_vm4, %v37_v48  }
  0x7a   :  { %v81_v49 = vpop.permute.xlu1 %80  }
  0x7d   :  { %v59_v50 = vpop.permute.xlu0 %58  }
  0x7e   :  { %61 = vst.msk [vmem:[%s737_s1] sm:$0xff] %vm60_vm5, %v59_v50  }
  0x7f   :  { %83 = vst.msk [vmem:[%s737_s1] sm:$0xff] %vm82_vm6, %v81_v49   ;;  %v103_v51 = vpop.permute.xlu1 %102  }
  0x80   :  { %105 = vst.msk [vmem:[%s737_s1] sm:$0xff] %vm104_vm7, %v103_v51  }
  0x82   :  { %v125_v52 = vpop.permute.xlu0 %124  }
  0x83   :  { %127 = vst.msk [vmem:[%s737_s1] sm:$0xff] %vm126_vm8, %v125_v52  }
  0x84   :  { %v147_v53 = vpop.permute.xlu1 %146  }
  0x85   :  { %149 = vst.msk [vmem:[%s737_s1] sm:$0xff] %vm148_vm9, %v147_v53  }
  0x87   :  { %v169_v54 = vpop.permute.xlu0 %168  }
  0x88   :  { %171 = vst.msk [vmem:[%s737_s1] sm:$0xff] %vm170_vm10, %v169_v54  }
  0x89   :  { %v191_v55 = vpop.permute.xlu1 %190  }
  0x8a   :  { %193 = vst.msk [vmem:[%s737_s1] sm:$0xff] %vm192_vm11, %v191_v55  }
  0x8c   :  { %v213_v56 = vpop.permute.xlu0 %212  }
  0x8d   :  { %215 = vst.msk [vmem:[%s737_s1] sm:$0xff] %vm214_vm12, %v213_v56  }
  0x8e   :  { %v235_v57 = vpop.permute.xlu1 %234  }
  0x8f   :  { %237 = vst.msk [vmem:[%s737_s1] sm:$0xff] %vm236_vm13, %v235_v57  }
  0x91   :  { %v257_v58 = vpop.permute.xlu0 %256  }
  0x92   :  { %259 = vst.msk [vmem:[%s737_s1] sm:$0xff] %vm258_vm14, %v257_v58  }
  0x93   :  { %v279_v59 = vpop.permute.xlu1 %278  }
  0x94   :  { %281 = vst.msk [vmem:[%s737_s1] sm:$0xff] %vm280_vm15, %v279_v59  }
  0x96   :  { %v301_v60 = vpop.permute.xlu0 %300  }
  0x97   :  { %303 = vst.msk [vmem:[%s737_s1] sm:$0xff] %vm302_vm0, %v301_v60  }
  0x98   :  { %v323_v61 = vpop.permute.xlu1 %322  }
  0x99   :  { %325 = vst.msk [vmem:[%s737_s1] sm:$0xff] %vm324_vm1, %v323_v61  }
  0x9b   :  { %v345_v62 = vpop.permute.xlu0 %344  }
  0x9c   :  { %347 = vst.msk [vmem:[%s737_s1] sm:$0xff] %vm346_vm2, %v345_v62  }

// kernel: residual_block.1
= control target key start
LH: loop header
LB: loop body
LE: loop exit
PB: predicated region body
PF: predicated region fallthrough
CT: control target
= control target key end

     0   :  { %v1365_v0 = vmov 0.0   ;;  %vm1366_vm0 = vmmov 0   ;;  %v1367_v53 = vmov 0   ;;  %vm386_vm3 = vcmask 1040384   ;;  %s2137_s1 = inlined_call_operand.vmem [shape: f32[128,384], index: 1, kind: input, shape index: {}]   ;;  %s2138_s0 = inlined_call_operand.vmem [shape: f32[40,128], index: 0, kind: input, shape index: {}]   ;;  %s2139_s9 = inlined_call_operand.vmem [shape: f32[40,1], index: 9, kind: input, shape index: {}]   ;;  %s2140_s7 = inlined_call_operand.vmem [shape: f32[128,8], index: 7, kind: input, shape index: {}]   ;;  %s2141_s8 = inlined_call_operand.vmem [shape: f32[8,128], index: 8, kind: input, shape index: {}]   ;;  %s2142_s2 = inlined_call_operand.vmem [shape: f32[128,384], index: 2, kind: input, shape index: {}]   ;;  %s2143_s3 = inlined_call_operand.vmem [shape: f32[1,128], index: 3, kind: input, shape index: {}]   ;;  %s2144_s4 = inlined_call_operand.vmem [shape: f32[1,128], index: 4, kind: input, shape index: {}]   ;;  %s2145_s5 = inlined_call_operand.vmem [shape: f32[1,128], index: 5, kind: input, shape index: {}]   ;;  %s2146_s6 = inlined_call_operand.vmem [shape: f32[1,128], index: 6, kind: input, shape index: {}]   ;;  %s2147_s10 = inlined_call_operand.vmem [shape: f32[40,128], index: 10, kind: output, shape index: {}]  }
   0x1   :  { %1179 = vmatprep.subr.mxu1 %v1365_v0  ;;  %v108_v1 = vld [vmem:[%s2137_s1 + $0x170] sm:$0xff]  ;;  %v109_v2 = vld [vmem:[%s2137_s1 + $0x178] sm:$0xff]  ;;  %v107_v3 = vld [vmem:[%s2137_s1 + $0x168] sm:$0xff]  ;;  %1211 = vmatprep.mubr.msk.f32.mxu1 %vm1366_vm0, %v1365_v0  ;;  %vm467_vm4 = vcmask 64512  }
   0x2   :  { %110 = vmatprep.subr.mxu0 %v108_v1  ;;  %1180 = vmatpush3.msra.mxu1 %v109_v2  ;;  %v105_v4 = vld [vmem:[%s2137_s1 + $0x158] sm:$0xff]  ;;  %v106_v5 = vld [vmem:[%s2137_s1 + $0x160] sm:$0xff]  ;;  %v104_v6 = vld [vmem:[%s2137_s1 + $0x150] sm:$0xff] }
   0x3   :  { %111 = vmatpush1.msra.mxu0 %v107_v3  ;;  %1181 = vmatprep.subr.mxu1 %v1365_v0  ;;  %v102_v7 = vld [vmem:[%s2137_s1 + $0x140] sm:$0xff]  ;;  %v103_v8 = vld [vmem:[%s2137_s1 + $0x148] sm:$0xff]  ;;  %v101_v9 = vld [vmem:[%s2137_s1 + $0x138] sm:$0xff] }
   0x4   :  { %112 = vmatprep.subr.mxu0 %v105_v4  ;;  %1182 = vmatpush3.msra.mxu1 %v106_v5  ;;  %v99_v10 = vld [vmem:[%s2137_s1 + $0x128] sm:$0xff]  ;;  %v100_v11 = vld [vmem:[%s2137_s1 + $0x130] sm:$0xff]  ;;  %v98_v12 = vld [vmem:[%s2137_s1 + $0x120] sm:$0xff] }
   0x5   :  { %113 = vmatpush1.msra.mxu0 %v104_v6  ;;  %1183 = vmatprep.subr.mxu1 %v1365_v0  ;;  %v96_v13 = vld [vmem:[%s2137_s1 + $0x110] sm:$0xff]  ;;  %v97_v14 = vld [vmem:[%s2137_s1 + $0x118] sm:$0xff]  ;;  %v95_v15 = vld [vmem:[%s2137_s1 + $0x108] sm:$0xff] }
   0x6   :  { %114 = vmatprep.subr.mxu0 %v102_v7  ;;  %1184 = vmatpush3.msra.mxu1 %v103_v8  ;;  %v93_v16 = vld [vmem:[%s2137_s1 + $0xf8] sm:$0xff]  ;;  %v94_v17 = vld [vmem:[%s2137_s1 + $0x100] sm:$0xff]  ;;  %v92_v18 = vld [vmem:[%s2137_s1 + $0xf0] sm:$0xff] }
   0x7   :  { %115 = vmatpush1.msra.mxu0 %v101_v9  ;;  %1185 = vmatprep.subr.mxu1 %v1365_v0  ;;  %v90_v19 = vld [vmem:[%s2137_s1 + $0xe0] sm:$0xff]  ;;  %v91_v20 = vld [vmem:[%s2137_s1 + $0xe8] sm:$0xff]  ;;  %v89_v21 = vld [vmem:[%s2137_s1 + $0xd8] sm:$0xff] }
   0x8   :  { %116 = vmatprep.subr.mxu0 %v99_v10  ;;  %1186 = vmatpush3.msra.mxu1 %v100_v11  ;;  %v87_v22 = vld [vmem:[%s2137_s1 + $0xc8] sm:$0xff]  ;;  %v88_v23 = vld [vmem:[%s2137_s1 + $0xd0] sm:$0xff]  ;;  %v86_v24 = vld [vmem:[%s2137_s1 + $0xc0] sm:$0xff] }
   0x9   :  { %117 = vmatpush1.msra.mxu0 %v98_v12  ;;  %1187 = vmatprep.subr.mxu1 %v1365_v0  ;;  %v84_v25 = vld [vmem:[%s2137_s1 + $0xb0] sm:$0xff]  ;;  %v85_v26 = vld [vmem:[%s2137_s1 + $0xb8] sm:$0xff]  ;;  %v83_v27 = vld [vmem:[%s2137_s1 + $0xa8] sm:$0xff] }
   0xa   :  { %118 = vmatprep.subr.mxu0 %v96_v13  ;;  %1188 = vmatpush3.msra.mxu1 %v97_v14  ;;  %v81_v28 = vld [vmem:[%s2137_s1 + $0x98] sm:$0xff]  ;;  %v82_v29 = vld [vmem:[%s2137_s1 + $0xa0] sm:$0xff]  ;;  %v80_v30 = vld [vmem:[%s2137_s1 + $0x90] sm:$0xff] }
   0xb   :  { %119 = vmatpush1.msra.mxu0 %v95_v15  ;;  %1189 = vmatprep.subr.mxu1 %v1365_v0  ;;  %v78_v31 = vld [vmem:[%s2137_s1 + $0x80] sm:$0xff]  ;;  %v79_v32 = vld [vmem:[%s2137_s1 + $0x88] sm:$0xff]  ;;  %v77_v33 = vld [vmem:[%s2137_s1 + $0x78] sm:$0xff]  ;;  %v300_v15 = vlaneseq }
   0xc   :  { %120 = vmatprep.subr.mxu0 %v93_v16  ;;  %1190 = vmatpush3.msra.mxu1 %v94_v17  ;;  %v75_v34 = vld [vmem:[%s2137_s1 + $0x68] sm:$0xff]  ;;  %v76_v35 = vld [vmem:[%s2137_s1 + $0x70] sm:$0xff]  ;;  %v74_v36 = vld [vmem:[%s2137_s1 + $0x60] sm:$0xff] }
   0xd   :  { %121 = vmatpush1.msra.mxu0 %v92_v18  ;;  %1191 = vmatprep.subr.mxu1 %v1365_v0  ;;  %v72_v37 = vld [vmem:[%s2137_s1 + $0x50] sm:$0xff]  ;;  %v73_v38 = vld [vmem:[%s2137_s1 + $0x58] sm:$0xff]  ;;  %v71_v39 = vld [vmem:[%s2137_s1 + $0x48] sm:$0xff] }
   0xe   :  { %122 = vmatprep.subr.mxu0 %v90_v19  ;;  %1192 = vmatpush3.msra.mxu1 %v91_v20  ;;  %v69_v40 = vld [vmem:[%s2137_s1 + $0x38] sm:$0xff]  ;;  %v70_v41 = vld [vmem:[%s2137_s1 + $0x40] sm:$0xff]  ;;  %v68_v42 = vld [vmem:[%s2137_s1 + $0x30] sm:$0xff]  ;;  %v1759_v19 = vshrl.u32 %v300_v15, 7 }
   0xf   :  { %123 = vmatpush1.msra.mxu0 %v89_v21  ;;  %1193 = vmatprep.subr.mxu1 %v1365_v0  ;;  %v66_v43 = vld [vmem:[%s2137_s1 + $0x20] sm:$0xff]  ;;  %v67_v44 = vld [vmem:[%s2137_s1 + $0x28] sm:$0xff]  ;;  %v65_v45 = vld [vmem:[%s2137_s1 + $0x18] sm:$0xff] }
  0x10   :  { %124 = vmatprep.subr.mxu0 %v87_v22  ;;  %1194 = vmatpush3.msra.mxu1 %v88_v23  ;;  %v63_v46 = vld [vmem:[%s2137_s1 + $0x8] sm:$0xff]  ;;  %v64_v47 = vld [vmem:[%s2137_s1 + $0x10] sm:$0xff]  ;;  %v62_v48 = vld [vmem:[%s2137_s1] sm:$0xff]  ;;  %vm302_vm1 = vcmp.lt.s32.totalorder %v1759_v19, 1  ;;  %vm313_vm2 = vcmp.lt.s32.totalorder %v1759_v19, 7 }
  0x11   :  { %125 = vmatpush1.msra.mxu0 %v86_v24  ;;  %1195 = vmatprep.subr.mxu1 %v1365_v0  ;;  %v35_v49 = vld [vmem:[%s2138_s0] sm:$0xff]  ;;  %v42_v51 = vld [vmem:[%s2139_s9 + $0x10] sm:$0xff]  ;;  %v36_v52 = vld [vmem:[%s2138_s0 + $0x8] sm:$0xff] }
  0x12   :  { %126 = vmatprep.subr.mxu0 %v84_v25  ;;  %1196 = vmatpush3.msra.mxu1 %v85_v26  ;;  %v40_v50 = vld [vmem:[%s2139_s9] sm:$0xff]  ;;  %v41_v54 = vld [vmem:[%s2139_s9 + $0x8] sm:$0xff]  ;;  %v43_v55 = vld [vmem:[%s2139_s9 + $0x18] sm:$0xff] }
  0x13   :  { %127 = vmatpush1.msra.mxu0 %v83_v27  ;;  %1197 = vmatprep.subr.mxu1 %v1365_v0  ;;  %v1614_v56 = vld [vmem:[%s2138_s0 + $0x10] sm:$0xff]  ;;  %v44_v57 = vld [vmem:[%s2139_s9 + $0x20] sm:$0xff]  ;;  %v1629_v58 = vld [vmem:[%s2138_s0 + $0x18] sm:$0xff] }
  0x14   :  { %128 = vmatprep.subr.mxu0 %v81_v28  ;;  %1198 = vmatpush3.msra.mxu1 %v82_v29  ;;  %v1639_v59 = vld [vmem:[%s2138_s0 + $0x20] sm:$0xff]  ;;  %v1650_v60 = vld [vmem:[%s2140_s7 + $0x78] sm:$0xff]  ;;  %v1657_v61 = vld [vmem:[%s2140_s7 + $0x70] sm:$0xff] }
  0x15   :  { %129 = vmatpush1.msra.mxu0 %v80_v30  ;;  %1199 = vmatprep.subr.mxu1 %v1365_v0  ;;  %v1664_v62 = vld [vmem:[%s2140_s7 + $0x68] sm:$0xff]  ;;  %v1671_v63 = vld [vmem:[%s2140_s7 + $0x60] sm:$0xff]  ;;  %v1678_v1 = vld [vmem:[%s2140_s7 + $0x58] sm:$0xff] }
  0x16   :  { %130 = vmatprep.subr.mxu0 %v78_v31  ;;  %1200 = vmatpush3.msra.mxu1 %v79_v32  ;;  %v1685_v2 = vld [vmem:[%s2140_s7 + $0x50] sm:$0xff]  ;;  %v1692_v3 = vld [vmem:[%s2140_s7 + $0x48] sm:$0xff]  ;;  %v1699_v4 = vld [vmem:[%s2140_s7 + $0x40] sm:$0xff] }
  0x17   :  { %131 = vmatpush1.msra.mxu0 %v77_v33  ;;  %1201 = vmatprep.subr.mxu1 %v1365_v0  ;;  %v1706_v5 = vld [vmem:[%s2140_s7 + $0x38] sm:$0xff]  ;;  %v1713_v6 = vld [vmem:[%s2140_s7 + $0x30] sm:$0xff]  ;;  %v1720_v7 = vld [vmem:[%s2140_s7 + $0x28] sm:$0xff] }
  0x18   :  { %132 = vmatprep.subr.mxu0 %v75_v34  ;;  %1202 = vmatpush3.msra.mxu1 %v76_v35  ;;  %v1727_v8 = vld [vmem:[%s2140_s7 + $0x20] sm:$0xff]  ;;  %v1734_v9 = vld [vmem:[%s2140_s7 + $0x18] sm:$0xff]  ;;  %v1739_v10 = vld [vmem:[%s2140_s7 + $0x10] sm:$0xff] }
  0x19   :  { %133 = vmatpush1.msra.mxu0 %v74_v36  ;;  %1203 = vmatprep.subr.mxu1 %v1365_v0  ;;  %v1746_v11 = vld [vmem:[%s2140_s7 + $0x8] sm:$0xff]  ;;  %v1753_v12 = vld [vmem:[%s2140_s7] sm:$0xff] }
  0x1a   :  { %134 = vmatprep.subr.mxu0 %v72_v37  ;;  %1204 = vmatpush3.msra.mxu1 %v73_v38 }
  0x1b   :  { %135 = vmatpush1.msra.mxu0 %v71_v39  ;;  %1205 = vmatprep.subr.mxu1 %v1365_v0 }
  0x1c   :  { %136 = vmatprep.subr.mxu0 %v69_v40  ;;  %1206 = vmatpush3.msra.mxu1 %v70_v41 }
  0x1d   :  { %137 = vmatpush1.msra.mxu0 %v68_v42  ;;  %1207 = vmatprep.subr.mxu1 %v1365_v0 }
  0x1e   :  { %138 = vmatprep.subr.mxu0 %v66_v43  ;;  %1208 = vmatpush3.msra.mxu1 %v67_v44 }
  0x1f   :  { %139 = vmatpush1.msra.mxu0 %v65_v45  ;;  %1209 = vmatprep.subr.mxu1 %v1365_v0 }
  0x20   :  { %140 = vmatprep.subr.mxu0 %v63_v46  ;;  %1210 = vmatpush3.msra.mxu1 %v64_v47 }
  0x21   :  { %141 = vmatpush1.msra.mxu0 %v62_v48  ;;  %174 = vmatprep.mubr.f32.mxu0 %v1365_v0 }
  0x22   :  { %1212 = vmatmul.mubr.f32.vlgmr.msra.gmra.mxu1 %v35_v49  ;;  %175 = vmatmul.mubr.f32.vlgmr.msra.gmra.mxu0 %v35_v49 }
  0x23   :  { %1214 = vmatprep.mubr.msk.f32.mxu1 %vm1366_vm0, %v1365_v0  ;;  %180 = vmatprep.mubr.f32.mxu0 %v1365_v0 }
  0x24   :  { %1357 = vset.pattern.permute.xlu0 %v1367_v53  ;;  %1358 = vset.pattern.permute.xlu1 %v1367_v53 }
  0x25   :  { %333 = vperm.xlu0 %1357, %v40_v50   ;;  %343 = vperm.xlu1 %1358, %v42_v51  }
  0x26   :  { %1215 = vmatmul.mubr.f32.gmra.mxu1 %v36_v52  ;;  %181 = vmatmul.mubr.f32.gmra.mxu0 %v36_v52 }
  0x27   :  { %1217 = vmatprep.mubr.msk.f32.mxu1 %vm1366_vm0, %v1365_v0  ;;  %186 = vmatprep.mubr.f32.mxu0 %v1365_v0 }
  0x28   :  { %1226 = vmatprep.subr.mxu0 %v1365_v0  ;;  %1261 = vmatprep.subr.mxu1 %v1365_v0 }
  0x29   :  { %338 = vperm.xlu0 %1357, %v41_v54   ;;  %348 = vperm.xlu1 %1358, %v43_v55  }
  0x2a   :  { %1218 = vmatmul.mubr.f32.gmra.mxu1 %v1614_v56  ;;  %187 = vmatmul.mubr.f32.gmra.mxu0 %v1614_v56 }
  0x2b   :  { %1220 = vmatprep.mubr.msk.f32.mxu1 %vm1366_vm0, %v1365_v0  ;;  %192 = vmatprep.mubr.f32.mxu0 %v1365_v0 }
  0x2c   :  { %1227 = vmatpush3.msra.mxu0 %v1650_v60 }
  0x2d   :  { %353 = vperm.xlu0 %1357, %v44_v57   ;;  %1228 = vmatprep.subr.mxu0 %v1365_v0 }
  0x2e   :  { %1221 = vmatmul.mubr.f32.gmra.mxu1 %v1629_v58  ;;  %193 = vmatmul.mubr.f32.gmra.mxu0 %v1629_v58 }
  0x2f   :  { %1223 = vmatprep.mubr.msk.f32.mxu1 %vm1366_vm0, %v1365_v0  ;;  %198 = vmatprep.mubr.f32.mxu0 %v1365_v0 }
  0x30   :  { %1229 = vmatpush3.msra.mxu0 %v1657_v61 }
  0x31   :  { %1230 = vmatprep.subr.mxu0 %v1365_v0 }
  0x32   :  { %1224 = vmatmul.mubr.f32.gmra.mxu1 %v1639_v59  ;;  %199 = vmatmul.mubr.f32.gmra.mxu0 %v1639_v59 }
  0x33   :  { %1258 = vmatprep.mubr.msk.f32.mxu0 %vm1366_vm0, %v1365_v0  ;;  %1263 = vmatprep.mubr.msk.f32.mxu1 %vm1366_vm0, %v1365_v0 }
  0x34   :  { %1231 = vmatpush3.msra.mxu0 %v1664_v62 }
  0x35   :  { %1232 = vmatprep.subr.mxu0 %v1365_v0 }
  0x36   :  { %1233 = vmatpush3.msra.mxu0 %v1671_v63 }
  0x37   :  { %1234 = vmatprep.subr.mxu0 %v1365_v0 }
  0x38   :  { %1235 = vmatpush3.msra.mxu0 %v1678_v1 }
  0x39   :  { %1236 = vmatprep.subr.mxu0 %v1365_v0 }
  0x3a   :  { %1237 = vmatpush3.msra.mxu0 %v1685_v2 }
  0x3b   :  { %1238 = vmatprep.subr.mxu0 %v1365_v0 }
  0x3c   :  { %1239 = vmatpush3.msra.mxu0 %v1692_v3 }
  0x3d   :  { %1240 = vmatprep.subr.mxu0 %v1365_v0 }
  0x3e   :  { %1241 = vmatpush3.msra.mxu0 %v1699_v4 }
  0x3f   :  { %1242 = vmatprep.subr.mxu0 %v1365_v0 }
  0x40   :  { %1243 = vmatpush3.msra.mxu0 %v1706_v5 }
  0x41   :  { %1244 = vmatprep.subr.mxu0 %v1365_v0 }
  0x42   :  { %1245 = vmatpush3.msra.mxu0 %v1713_v6 }
  0x43   :  { %1246 = vmatprep.subr.mxu0 %v1365_v0 }
  0x44   :  { %1247 = vmatpush3.msra.mxu0 %v1720_v7 }
  0x45   :  { %1248 = vmatprep.subr.mxu0 %v1365_v0 }
  0x46   :  { %1249 = vmatpush3.msra.mxu0 %v1727_v8 }
  0x47   :  { %1250 = vmatprep.subr.mxu0 %v1365_v0 }
  0x48   :  { %1251 = vmatpush3.msra.mxu0 %v1734_v9 }
  0x49   :  { %1252 = vmatprep.subr.mxu0 %v1365_v0 }
  0x4a   :  { %1253 = vmatpush3.msra.mxu0 %v1739_v10 }
  0x4b   :  { %1254 = vmatprep.subr.mxu0 %v1365_v0 }
  0x4c   :  { %1255 = vmatpush3.msra.mxu0 %v1746_v11 }
  0x4d   :  { %1256 = vmatprep.subr.mxu0 %v1365_v0 }
  0x4e   :  { %1257 = vmatpush3.msra.mxu0 %v1753_v12 }
  0x4f   :  { %1266 = vmatprep.subr.mxu0 %v1365_v0 }
  0xa0   :  { %v1765_v35 = vpop.permute.xlu0 %333  ;;  %v1775_v50 = vpop.permute.xlu1 %343 }
  0xa4   :  { %v1779_v57 = vpop.permute.xlu0 %338 }
  0xe2   :  { %v271_v13 = vpop.f32.mrf.mxu1  ;;  %v176_v14 = vpop.f32.mrf.mxu0 }
  0xe3   :  { %v295_v26 = vrot.slane %v176_v14, 7  ;;  %v308_v47 = vrot.slane %v271_v13, 1 }
  0xe4   :  { %v1213_v16 = vpop.f32.mrf.mxu1  ;;  %v178_v17 = vpop.f32.mrf.mxu0 }
  0xe6   :  { %v276_v18 = vpop.f32.mrf.mxu1  ;;  %v182_v20 = vpop.f32.mrf.mxu0 }
  0xe7   :  { %v296_v23 = vrot.slane %v182_v20, 7  ;;  %v309_v30 = vrot.slane %v276_v18, 1 }
  0xe8   :  { %v1216_v21 = vpop.f32.mrf.mxu1  ;;  %v184_v22 = vpop.f32.mrf.mxu0 }
  0xe9   :  { %v306_v31 = vsel %vm302_vm1, %v295_v26, %v296_v23  ;;  %v317_v21 = vsel %vm313_vm2, %v308_v47, %v309_v30 }
  0xea   :  { %v281_v24 = vpop.f32.mrf.mxu1  ;;  %v188_v25 = vpop.f32.mrf.mxu0  ;;  %v320_v39 = vadd.f32 %v306_v31, %v184_v22 }
  0xeb   :  { %v297_v27 = vrot.slane %v188_v25, 7  ;;  %v310_v32 = vrot.slane %v281_v24, 1 }
  0xec   :  { %v1219_v28 = vpop.f32.mrf.mxu1  ;;  %v190_v29 = vpop.f32.mrf.mxu0 }
  0xed   :  { %v305_v36 = vsel %vm302_vm1, %v296_v23, %v297_v27  ;;  %v316_v42 = vsel %vm313_vm2, %v309_v30, %v310_v32 }
  0xee   :  { %v286_v33 = vpop.f32.mrf.mxu1  ;;  %v194_v34 = vpop.f32.mrf.mxu0  ;;  %v321_v44 = vadd.f32 %v305_v36, %v190_v29  ;;  %v1777_v52 = vadd.f32 %v320_v39, %v316_v42 }
  0xef   :  { %v311_v37 = vrot.slane %v286_v33, 1  ;;  %v298_v38 = vrot.slane %v194_v34, 7  ;;  %v1811_v33 = vpop.permute.xlu0 %353 }
  0xf0   :  { %v1222_v40 = vpop.f32.mrf.mxu1  ;;  %v196_v41 = vpop.f32.mrf.mxu0  ;;  %v357_v22 = vmul.f32 %v1779_v57, %v1777_v52 }
  0xf1   :  { %v304_v43 = vsel %vm302_vm1, %v297_v27, %v298_v38  ;;  %v315_v48 = vsel %vm313_vm2, %v310_v32, %v311_v37 }
  0xf2   :  { %v291_v45 = vpop.f32.mrf.mxu1  ;;  %v200_v46 = vpop.f32.mrf.mxu0  ;;  %v322_v53 = vadd.f32 %v304_v43, %v196_v41  ;;  %v1787_v16 = vadd.f32 %v321_v44, %v315_v48  ;;  %v372_v29 = vmul.f32 %v357_v22, %v1777_v52 }
  0xf3   :  { %v312_v49 = vrot.slane %v291_v45, 1  ;;  %v299_v51 = vrot.slane %v200_v46, 7 }
  0xf4   :  { %v202_v54 = vpop.f32.mrf.mxu0  ;;  %v1225_v55 = vpop.f32.mrf.mxu1  ;;  %v358_v27 = vmul.f32 %v1775_v50, %v1787_v16 }
  0xf5   :  { %v314_v14 = vsel %vm313_vm2, %v311_v37, %v312_v49  ;;  %v307_v13 = vsel %vm302_vm1, %v299_v51, %v295_v26  ;;  %v303_v15 = vsel %vm302_vm1, %v298_v38, %v299_v51  ;;  %v318_v25 = vsel %vm313_vm2, %v312_v49, %v308_v47  ;;  %v1799_v26 = vpop.permute.xlu1 %348 }
  0xf6   :  { %v319_v18 = vadd.f32 %v307_v13, %v178_v17  ;;  %v323_v20 = vadd.f32 %v303_v15, %v202_v54  ;;  %v1793_v23 = vadd.f32 %v322_v53, %v314_v14  ;;  %v373_v34 = vmul.f32 %v358_v27, %v1787_v16 }
  0xf8   :  { %v1795_v24 = vadd.f32 %v319_v18, %v317_v21  ;;  %v1803_v17 = vadd.f32 %v323_v20, %v318_v25  ;;  %v359_v30 = vmul.f32 %v1799_v26, %v1793_v23  ;;  %v1824_v21 = vld [vmem:[%s2141_s8] sm:$0xff]  ;;  %v640_v25 = vld [vmem:[%s2142_s2 + $0x178] sm:$0xff] }
  0xf9   :  { %1262 = vmatpush3.msra.mxu1 %v1824_v21 }
  0xfa   :  { %v356_v28 = vmul.f32 %v1765_v35, %v1795_v24  ;;  %v360_v36 = vmul.f32 %v1811_v33, %v1803_v17  ;;  %v374_v40 = vmul.f32 %v359_v30, %v1793_v23 }
  0xfc   :  { %v361_v31 = vadd.f32 %v357_v22, %v356_v28  ;;  %v371_v32 = vmul.f32 %v356_v28, %v1795_v24  ;;  %v375_v42 = vmul.f32 %v360_v36, %v1803_v17  ;;  %v639_v22 = vld [vmem:[%s2142_s2 + $0x170] sm:$0xff]  ;;  %v634_v28 = vld [vmem:[%s2142_s2 + $0x148] sm:$0xff] }
  0xfd   :  { %641 = vmatprep.subr.mxu1 %v639_v22  ;;  %v619_v22 = vld [vmem:[%s2142_s2 + $0xd0] sm:$0xff] }
  0xfe   :  { %v362_v37 = vadd.f32 %v361_v31, %v358_v27  ;;  %v376_v38 = vadd.f32 %v372_v29, %v371_v32  ;;  %v637_v27 = vld [vmem:[%s2142_s2 + $0x160] sm:$0xff]  ;;  %v631_v29 = vld [vmem:[%s2142_s2 + $0x130] sm:$0xff] }
 0x100   :  { %v363_v39 = vadd.f32 %v362_v37, %v359_v30  ;;  %v377_v41 = vadd.f32 %v376_v38, %v373_v34  ;;  %v628_v30 = vld [vmem:[%s2142_s2 + $0x118] sm:$0xff] }
 0x102   :  { %v364_v43 = vadd.f32 %v363_v39, %v360_v36  ;;  %v378_v44 = vadd.f32 %v377_v41, %v374_v40  ;;  %v638_v41 = vld [vmem:[%s2142_s2 + $0x168] sm:$0xff] }
 0x104   :  { %v365_v45 = vrot.slane %v364_v43, 4  ;;  %v379_v46 = vadd.f32 %v378_v44, %v375_v42  ;;  %v635_v44 = vld [vmem:[%s2142_s2 + $0x150] sm:$0xff] }
 0x106   :  { %v366_v47 = vadd.f32 %v365_v45, %v364_v43  ;;  %v380_v48 = vrot.slane %v379_v46, 4  ;;  %v636_v43 = vld [vmem:[%s2142_s2 + $0x158] sm:$0xff]  ;;  %v633_v45 = vld [vmem:[%s2142_s2 + $0x140] sm:$0xff] }
 0x108   :  { %v367_v49 = vrot.slane %v366_v47, 2  ;;  %v381_v51 = vadd.f32 %v380_v48, %v379_v46  ;;  %v632_v46 = vld [vmem:[%s2142_s2 + $0x138] sm:$0xff]  ;;  %v629_v48 = vld [vmem:[%s2142_s2 + $0x120] sm:$0xff] }
 0x10a   :  { %v368_v53 = vadd.f32 %v367_v49, %v366_v47  ;;  %v382_v54 = vrot.slane %v381_v51, 2  ;;  %v630_v47 = vld [vmem:[%s2142_s2 + $0x128] sm:$0xff]  ;;  %v627_v49 = vld [vmem:[%s2142_s2 + $0x110] sm:$0xff] }
 0x10c   :  { %v369_v55 = vrot.slane %v368_v53, 1  ;;  %v383_v14 = vadd.f32 %v382_v54, %v381_v51  ;;  %v626_v51 = vld [vmem:[%s2142_s2 + $0x108] sm:$0xff]  ;;  %v623_v54 = vld [vmem:[%s2142_s2 + $0xf0] sm:$0xff] }
 0x10e   :  { %v384_v13 = vrot.slane %v383_v14, 1  ;;  %v370_v15 = vadd.f32 %v369_v55, %v368_v53  ;;  %v624_v53 = vld [vmem:[%s2142_s2 + $0xf8] sm:$0xff]  ;;  %v625_v55 = vld [vmem:[%s2142_s2 + $0x100] sm:$0xff] }
 0x110   :  { %v385_v18 = vadd.f32 %v384_v13, %v383_v14  ;;  %v621_v14 = vld [vmem:[%s2142_s2 + $0xe0] sm:$0xff]  ;;  %v620_v13 = vld [vmem:[%s2142_s2 + $0xd8] sm:$0xff] }
 0x112   :  { %v387_v20 = vsel %vm386_vm3, %v370_v15, %v385_v18  ;;  %v622_v15 = vld [vmem:[%s2142_s2 + $0xe8] sm:$0xff] }
 0x113   :  { %1259 = vmatmul.mubr.f32.vlgmr.msra.gmra.mxu0 %v387_v20  ;;  %v618_v18 = vld [vmem:[%s2142_s2 + $0xc8] sm:$0xff]  ;;  %v617_v20 = vld [vmem:[%s2142_s2 + $0xc0] sm:$0xff] }
 0x114   :  { %1298 = vmatprep.mubr.msk.f32.mxu0 %vm1366_vm0, %v1365_v0  ;;  %1267 = vmatpush3.msra.mxu0 %v640_v25  ;;  %v615_v25 = vld [vmem:[%s2142_s2 + $0xb0] sm:$0xff] }
 0x115   :  { %1268 = vmatprep.subr.mxu0 %v1365_v0 }
 0x116   :  { %1269 = vmatpush3.msra.mxu0 %v637_v27  ;;  %v614_v27 = vld [vmem:[%s2142_s2 + $0xa8] sm:$0xff] }
 0x117   :  { %1270 = vmatprep.subr.mxu0 %v1365_v0 }
 0x118   :  { %1271 = vmatpush3.msra.mxu0 %v634_v28  ;;  %v616_v28 = vld [vmem:[%s2142_s2 + $0xb8] sm:$0xff] }
 0x119   :  { %1272 = vmatprep.subr.mxu0 %v1365_v0 }
 0x11a   :  { %1273 = vmatpush3.msra.mxu0 %v631_v29  ;;  %v612_v29 = vld [vmem:[%s2142_s2 + $0x98] sm:$0xff] }
 0x11b   :  { %1274 = vmatprep.subr.mxu0 %v1365_v0 }
 0x11c   :  { %1275 = vmatpush3.msra.mxu0 %v628_v30  ;;  %v611_v30 = vld [vmem:[%s2142_s2 + $0x90] sm:$0xff] }
 0x11d   :  { %1276 = vmatprep.subr.mxu0 %v1365_v0 }
 0x11e   :  { %1277 = vmatpush3.msra.mxu0 %v625_v55 }
 0x11f   :  { %1278 = vmatprep.subr.mxu0 %v1365_v0 }
 0x120   :  { %1279 = vmatpush3.msra.mxu0 %v622_v15 }
 0x121   :  { %1280 = vmatprep.subr.mxu0 %v1365_v0 }
 0x122   :  { %1281 = vmatpush3.msra.mxu0 %v619_v22 }
 0x123   :  { %1282 = vmatprep.subr.mxu0 %v1365_v0 }
 0x124   :  { %1283 = vmatpush3.msra.mxu0 %v616_v28  ;;  %v2000_v28 = vsub.s32 0, %v1759_v19 }
 0x125   :  { %1284 = vmatprep.subr.mxu0 %v1365_v0 }
 0x1d3   :  { %v454_v31 = vpop.f32.mrf.mxu0 }
 0x1d4   :  { %v458_v32 = vmul.f32 0.001953125, %v454_v31  ;;  %v613_v31 = vld [vmem:[%s2142_s2 + $0xa0] sm:$0xff] }
 0x1d5   :  { %v1260_v34 = vpop.f32.mrf.mxu0  ;;  %1285 = vmatpush3.msra.mxu0 %v613_v31 }
 0x1d6   :  { %v459_v36 = vmul.f32 %v458_v32, %v458_v32  ;;  %1286 = vmatprep.subr.mxu0 %v1365_v0  ;;  %v608_v34 = vld [vmem:[%s2142_s2 + $0x78] sm:$0xff] }
 0x1d8   :  { %v461_v37 = vrot.slane %v459_v36, 7  ;;  %v610_v36 = vld [vmem:[%s2142_s2 + $0x88] sm:$0xff] }
 0x1d9   :  { %1287 = vmatpush3.msra.mxu0 %v610_v36 }
 0x1da   :  { %v463_v38 = vsub.f32 %v458_v32, %v461_v37  ;;  %v606_v37 = vld [vmem:[%s2142_s2 + $0x68] sm:$0xff]  ;;  %1288 = vmatprep.subr.mxu0 %v1365_v0 }
 0x1dc   :  { %v464_v39 = vadd.f32 1e-05, %v463_v38  ;;  %v605_v38 = vld [vmem:[%s2142_s2 + $0x60] sm:$0xff] }
 0x1de   :  { %1359 = vrsqrt.f32 %v464_v39  ;;  %v607_v39 = vld [vmem:[%s2142_s2 + $0x70] sm:$0xff] }
 0x1df   :  { %1289 = vmatpush3.msra.mxu0 %v607_v39 }
 0x1e0   :  { %1290 = vmatprep.subr.mxu0 %v1365_v0 }
 0x1eb   :  { %v1360_v40 = vpop.eup %1359 }
 0x1ec   :  { %v466_v42 = vsel %vm386_vm3, %v458_v32, %v1360_v40  ;;  %v609_v32 = vld [vmem:[%s2142_s2 + $0x80] sm:$0xff]  ;;  %v603_v40 = vld [vmem:[%s2142_s2 + $0x50] sm:$0xff] }
 0x1ed   :  { %1264 = vmatmul.mubr.msk.f32.vlgmr.msra.gmra.mxu1 %vm467_vm4, %v466_v42  ;;  %v604_v42 = vld [vmem:[%s2142_s2 + $0x58] sm:$0xff] }
 0x1ee   :  { %642 = vmatpush1.msra.mxu1 %v638_v41  ;;  %705 = vmatprep.mubr.f32.mxu1 %v1365_v0  ;;  %v602_v41 = vld [vmem:[%s2142_s2 + $0x48] sm:$0xff] }
 0x1ef   :  { %643 = vmatprep.subr.mxu1 %v636_v43  ;;  %v600_v43 = vld [vmem:[%s2142_s2 + $0x38] sm:$0xff]  ;;  %1291 = vmatpush3.msra.mxu0 %v604_v42 }
 0x1f0   :  { %644 = vmatpush1.msra.mxu1 %v635_v44  ;;  %v599_v44 = vld [vmem:[%s2142_s2 + $0x30] sm:$0xff]  ;;  %1292 = vmatprep.subr.mxu0 %v1365_v0 }
 0x1f1   :  { %645 = vmatprep.subr.mxu1 %v633_v45  ;;  %v601_v45 = vld [vmem:[%s2142_s2 + $0x40] sm:$0xff] }
 0x1f2   :  { %646 = vmatpush1.msra.mxu1 %v632_v46  ;;  %v597_v46 = vld [vmem:[%s2142_s2 + $0x20] sm:$0xff]  ;;  %1293 = vmatpush3.msra.mxu0 %v601_v45 }
 0x1f3   :  { %647 = vmatprep.subr.mxu1 %v630_v47  ;;  %v596_v47 = vld [vmem:[%s2142_s2 + $0x18] sm:$0xff]  ;;  %1294 = vmatprep.subr.mxu0 %v1365_v0 }
 0x1f4   :  { %648 = vmatpush1.msra.mxu1 %v629_v48  ;;  %v598_v48 = vld [vmem:[%s2142_s2 + $0x28] sm:$0xff] }
 0x1f5   :  { %649 = vmatprep.subr.mxu1 %v627_v49  ;;  %v594_v49 = vld [vmem:[%s2142_s2 + $0x8] sm:$0xff]  ;;  %1295 = vmatpush3.msra.mxu0 %v598_v48 }
 0x1f6   :  { %650 = vmatpush1.msra.mxu1 %v626_v51  ;;  %v593_v51 = vld [vmem:[%s2142_s2] sm:$0xff]  ;;  %1296 = vmatprep.subr.mxu0 %v1365_v0 }
 0x1f7   :  { %651 = vmatprep.subr.mxu1 %v624_v53  ;;  %v595_v53 = vld [vmem:[%s2142_s2 + $0x10] sm:$0xff] }
 0x1f8   :  { %652 = vmatpush1.msra.mxu1 %v623_v54  ;;  %1297 = vmatpush3.msra.mxu0 %v595_v53  ;;  %v1368_v54 = vmov 1966171168  }
 0x1f9   :  { %653 = vmatprep.subr.mxu1 %v621_v14  ;;  %1348 = vmatprep.subr.mxu0 %v1365_v0  ;;  %v543_v55 = vunpack.c.l.s4 %v1368_v54 }
 0x1fa   :  { %654 = vmatpush1.msra.mxu1 %v620_v13 }
 0x1fb   :  { %655 = vmatprep.subr.mxu1 %v618_v18  ;;  %v544_v14 = vunpack.c.0.s8 %v543_v55 }
 0x1fc   :  { %656 = vmatpush1.msra.mxu1 %v617_v20 }
 0x1fd   :  { %657 = vmatprep.subr.mxu1 %v615_v25  ;;  %v1992_v13 = vsub.s32 %v544_v14, %v1759_v19  ;;  %v329_v25 = vld [vmem:[%s2143_s3] sm:$0x1] }
 0x1fe   :  { %658 = vmatpush1.msra.mxu1 %v614_v27 }
 0x1ff   :  { %659 = vmatprep.subr.mxu1 %v612_v29 }
 0x200   :  { %660 = vmatpush1.msra.mxu1 %v611_v30  ;;  %v330_v30 = vld [vmem:[%s2144_s4] sm:$0x1] }
 0x201   :  { %661 = vmatprep.subr.mxu1 %v609_v32 }
 0x202   :  { %662 = vmatpush1.msra.mxu1 %v608_v34 }
 0x203   :  { %663 = vmatprep.subr.mxu1 %v606_v37 }
 0x204   :  { %664 = vmatpush1.msra.mxu1 %v605_v38 }
 0x205   :  { %665 = vmatprep.subr.mxu1 %v603_v40 }
 0x206   :  { %666 = vmatpush1.msra.mxu1 %v602_v41 }
 0x207   :  { %667 = vmatprep.subr.mxu1 %v600_v43 }
 0x208   :  { %668 = vmatpush1.msra.mxu1 %v599_v44 }
 0x209   :  { %669 = vmatprep.subr.mxu1 %v597_v46 }
 0x20a   :  { %670 = vmatpush1.msra.mxu1 %v596_v47 }
 0x20b   :  { %671 = vmatprep.subr.mxu1 %v594_v49 }
 0x20c   :  { %672 = vmatpush1.msra.mxu1 %v593_v51 }
 0x20d   :  { %1313 = vmatprep.subr.mxu1 %v1365_v0 }
 0x2ad   :  { %v537_v15 = vpop.f32.mrf.mxu1 }
 0x2ae   :  { %v548_v18 = vrot.slane %v537_v15, %v1992_v13 }
 0x2af   :  { %v1265_v20 = vpop.f32.mrf.mxu1 }
 0x2b0   :  { %v549_v22 = vcombine.high %v548_v18, %v548_v18 }
 0x2b2   :  { %v556_v27 = vrot.slane %v549_v22, %v1992_v13 }
 0x2b4   :  { %v558_v29 = vmul.f32 %v556_v27, %v329_v25 }
 0x2b6   :  { %v559_v31 = vmul.f32 %v558_v29, %v537_v15  ;;  %v565_v32 = vrot.slane %v558_v29, %v2000_v28 }
 0x2b8   :  { %v560_v34 = vsub.f32 %v330_v30, %v559_v31  ;;  %v567_v37 = vmul.f32 %v565_v32, %v1795_v24  ;;  %v568_v38 = vmul.f32 %v565_v32, %v1777_v52  ;;  %v569_v42 = vmul.f32 %v565_v32, %v1787_v16 }
 0x2b9   :  { %v570_v46 = vmul.f32 %v565_v32, %v1793_v23  ;;  %v571_v16 = vmul.f32 %v565_v32, %v1803_v17 }
 0x2ba   :  { %v576_v36 = vrot.slane %v560_v34, %v2000_v28 }
 0x2bc   :  { %v578_v39 = vadd.f32 %v576_v36, %v567_v37  ;;  %v579_v40 = vadd.f32 %v576_v36, %v568_v38  ;;  %v580_v45 = vadd.f32 %v576_v36, %v569_v42  ;;  %v581_v47 = vadd.f32 %v576_v36, %v570_v46 }
 0x2bd   :  { %v582_v49 = vadd.f32 %v576_v36, %v571_v16 }
 0x2be   :  { %v583_v41 = vmax.f32 %v578_v39, 0.0  ;;  %v584_v44 = vmax.f32 %v579_v40, 0.0  ;;  %v585_v24 = vmax.f32 %v580_v45, 0.0  ;;  %v586_v48 = vmax.f32 %v581_v47, 0.0 }
 0x2bf   :  { %v587_v17 = vmax.f32 %v582_v49, 0.0 }
 0x2c0   :  { %v588_v43 = vmul.f32 %v583_v41, %v1765_v35  ;;  %v589_v52 = vmul.f32 %v584_v44, %v1779_v57  ;;  %v590_v23 = vmul.f32 %v585_v24, %v1775_v50 }
 0x2c2   :  { %706 = vmatmul.mubr.f32.vlgmr.msra.gmra.mxu1 %v588_v43  ;;  %1299 = vmatmul.mubr.f32.vlgmr.msra.gmra.mxu0 %v588_v43 }
 0x2c3   :  { %711 = vmatprep.mubr.f32.mxu1 %v1365_v0  ;;  %1301 = vmatprep.mubr.msk.f32.mxu0 %vm1366_vm0, %v1365_v0 }
 0x2c4   :  { %1314 = vmatpush3.msra.mxu1 %v1650_v60  ;;  %1349 = vmatpush3.msra.mxu0 %v1824_v21  ;;  %v591_v60 = vmul.f32 %v586_v48, %v1799_v26 }
 0x2c5   :  { %1315 = vmatprep.subr.mxu1 %v1365_v0 }
 0x2c6   :  { %712 = vmatmul.mubr.f32.gmra.mxu1 %v589_v52  ;;  %1302 = vmatmul.mubr.f32.gmra.mxu0 %v589_v52 }
 0x2c7   :  { %717 = vmatprep.mubr.f32.mxu1 %v1365_v0  ;;  %1304 = vmatprep.mubr.msk.f32.mxu0 %vm1366_vm0, %v1365_v0 }
 0x2c8   :  { %1316 = vmatpush3.msra.mxu1 %v1657_v61  ;;  %v592_v61 = vmul.f32 %v587_v17, %v1811_v33 }
 0x2c9   :  { %1317 = vmatprep.subr.mxu1 %v1365_v0 }
 0x2ca   :  { %718 = vmatmul.mubr.f32.gmra.mxu1 %v590_v23  ;;  %1305 = vmatmul.mubr.f32.gmra.mxu0 %v590_v23 }
 0x2cb   :  { %723 = vmatprep.mubr.f32.mxu1 %v1365_v0  ;;  %1307 = vmatprep.mubr.msk.f32.mxu0 %vm1366_vm0, %v1365_v0 }
 0x2cc   :  { %1318 = vmatpush3.msra.mxu1 %v1664_v62 }
 0x2cd   :  { %1319 = vmatprep.subr.mxu1 %v1365_v0 }
 0x2ce   :  { %724 = vmatmul.mubr.f32.gmra.mxu1 %v591_v60  ;;  %1308 = vmatmul.mubr.f32.gmra.mxu0 %v591_v60 }
 0x2cf   :  { %729 = vmatprep.mubr.f32.mxu1 %v1365_v0  ;;  %1310 = vmatprep.mubr.msk.f32.mxu0 %vm1366_vm0, %v1365_v0 }
 0x2d0   :  { %1320 = vmatpush3.msra.mxu1 %v1671_v63 }
 0x2d1   :  { %1321 = vmatprep.subr.mxu1 %v1365_v0 }
 0x2d2   :  { %730 = vmatmul.mubr.f32.gmra.mxu1 %v592_v61  ;;  %1311 = vmatmul.mubr.f32.gmra.mxu0 %v592_v61 }
 0x2d3   :  { %1322 = vmatpush3.msra.mxu1 %v1678_v1  ;;  %1345 = vmatprep.mubr.msk.f32.mxu1 %vm1366_vm0, %v1365_v0 }
 0x2d4   :  { %1323 = vmatprep.subr.mxu1 %v1365_v0  ;;  %1350 = vmatprep.mubr.msk.f32.mxu0 %vm1366_vm0, %v1365_v0 }
 0x2d5   :  { %1324 = vmatpush3.msra.mxu1 %v1685_v2 }
 0x2d6   :  { %1325 = vmatprep.subr.mxu1 %v1365_v0 }
 0x2d7   :  { %1326 = vmatpush3.msra.mxu1 %v1692_v3 }
 0x2d8   :  { %1327 = vmatprep.subr.mxu1 %v1365_v0 }
 0x2d9   :  { %1328 = vmatpush3.msra.mxu1 %v1699_v4 }
 0x2da   :  { %1329 = vmatprep.subr.mxu1 %v1365_v0 }
 0x2db   :  { %1330 = vmatpush3.msra.mxu1 %v1706_v5 }
 0x2dc   :  { %1331 = vmatprep.subr.mxu1 %v1365_v0 }
 0x2dd   :  { %1332 = vmatpush3.msra.mxu1 %v1713_v6 }
 0x2de   :  { %1333 = vmatprep.subr.mxu1 %v1365_v0 }
 0x2df   :  { %1334 = vmatpush3.msra.mxu1 %v1720_v7 }
 0x2e0   :  { %1335 = vmatprep.subr.mxu1 %v1365_v0 }
 0x2e1   :  { %1336 = vmatpush3.msra.mxu1 %v1727_v8 }
 0x2e2   :  { %1337 = vmatprep.subr.mxu1 %v1365_v0 }
 0x2e3   :  { %1338 = vmatpush3.msra.mxu1 %v1734_v9 }
 0x2e4   :  { %1339 = vmatprep.subr.mxu1 %v1365_v0 }
 0x2e5   :  { %1340 = vmatpush3.msra.mxu1 %v1739_v10 }
 0x2e6   :  { %1341 = vmatprep.subr.mxu1 %v1365_v0 }
 0x2e7   :  { %1342 = vmatpush3.msra.mxu1 %v1746_v11 }
 0x2e8   :  { %1343 = vmatprep.subr.mxu1 %v1365_v0 }
 0x2e9   :  { %1344 = vmatpush3.msra.mxu1 %v1753_v12 }
 0x382   :  { %v707_v62 = vpop.f32.mrf.mxu1  ;;  %v802_v63 = vpop.f32.mrf.mxu0 }
 0x383   :  { %v826_v51 = vrot.slane %v707_v62, 7  ;;  %v836_v41 = vrot.slane %v802_v63, 1 }
 0x384   :  { %v709_v1 = vpop.f32.mrf.mxu1  ;;  %v1300_v2 = vpop.f32.mrf.mxu0 }
 0x386   :  { %v713_v3 = vpop.f32.mrf.mxu1  ;;  %v807_v4 = vpop.f32.mrf.mxu0 }
 0x387   :  { %v827_v9 = vrot.slane %v713_v3, 7  ;;  %v837_v55 = vrot.slane %v807_v4, 1 }
 0x388   :  { %v715_v5 = vpop.f32.mrf.mxu1  ;;  %v1303_v6 = vpop.f32.mrf.mxu0 }
 0x389   :  { %v834_v12 = vsel %vm302_vm1, %v826_v51, %v827_v9  ;;  %v844_v47 = vsel %vm313_vm2, %v836_v41, %v837_v55 }
 0x38a   :  { %v719_v7 = vpop.f32.mrf.mxu1  ;;  %v812_v8 = vpop.f32.mrf.mxu0  ;;  %v847_v27 = vadd.f32 %v834_v12, %v715_v5 }
 0x38b   :  { %v828_v53 = vrot.slane %v719_v7, 7  ;;  %v838_v11 = vrot.slane %v812_v8, 1 }
 0x38c   :  { %v721_v10 = vpop.f32.mrf.mxu1  ;;  %v1306_v21 = vpop.f32.mrf.mxu0 }
 0x38d   :  { %v843_v22 = vsel %vm313_vm2, %v837_v55, %v838_v11  ;;  %v833_v25 = vsel %vm302_vm1, %v827_v9, %v828_v53 }
 0x38e   :  { %v725_v54 = vpop.f32.mrf.mxu1  ;;  %v817_v0 = vpop.f32.mrf.mxu0  ;;  %v2075_v37 = vadd.f32 %v847_v27, %v843_v22  ;;  %v848_v38 = vadd.f32 %v833_v25, %v721_v10 }
 0x38f   :  { %v829_v14 = vrot.slane %v725_v54, 7  ;;  %v839_v15 = vrot.slane %v817_v0, 1 }
 0x390   :  { %v727_v18 = vpop.f32.mrf.mxu1  ;;  %v1309_v20 = vpop.f32.mrf.mxu0  ;;  %v859_v16 = vmul.f32 %v2075_v37, %v1779_v57 }
 0x391   :  { %v842_v31 = vsel %vm313_vm2, %v838_v11, %v839_v15  ;;  %v832_v32 = vsel %vm302_vm1, %v828_v53, %v829_v14 }
 0x392   :  { %v731_v29 = vpop.f32.mrf.mxu1  ;;  %v822_v30 = vpop.f32.mrf.mxu0  ;;  %v2083_v45 = vadd.f32 %v848_v38, %v842_v31  ;;  %v849_v46 = vadd.f32 %v832_v32, %v727_v18  ;;  %v874_v62 = vmul.f32 %v859_v16, %v2075_v37 }
 0x393   :  { %v830_v34 = vrot.slane %v731_v29, 7  ;;  %v840_v36 = vrot.slane %v822_v30, 1 }
 0x394   :  { %v733_v39 = vpop.f32.mrf.mxu1  ;;  %v1312_v40 = vpop.f32.mrf.mxu0  ;;  %v860_v60 = vmul.f32 %v2083_v45, %v1775_v50 }
 0x395   :  { %v835_v42 = vsel %vm302_vm1, %v830_v34, %v826_v51  ;;  %v841_v43 = vsel %vm313_vm2, %v839_v15, %v840_v36  ;;  %v831_v44 = vsel %vm302_vm1, %v829_v14, %v830_v34  ;;  %v845_v49 = vsel %vm313_vm2, %v840_v36, %v836_v41  ;;  %v856_v40 = vld [vmem:[%s2145_s5] sm:$0x1] }
 0x396   :  { %v846_v52 = vadd.f32 %v835_v42, %v709_v1  ;;  %v850_v24 = vadd.f32 %v831_v44, %v733_v39  ;;  %v854_v48 = vadd.f32 %v849_v46, %v841_v43  ;;  %v875_v3 = vmul.f32 %v860_v60, %v2083_v45  ;;  %v857_v43 = vld [vmem:[%s2146_s6] sm:$0x1] }
 0x398   :  { %v851_v23 = vadd.f32 %v846_v52, %v844_v47  ;;  %v855_v61 = vadd.f32 %v850_v24, %v845_v49  ;;  %v861_v2 = vmul.f32 %v854_v48, %v1799_v26 }
 0x39a   :  { %v858_v17 = vmul.f32 %v851_v23, %v1765_v35  ;;  %v862_v4 = vmul.f32 %v855_v61, %v1811_v33  ;;  %v876_v19 = vmul.f32 %v861_v2, %v854_v48 }
 0x39c   :  { %v863_v63 = vadd.f32 %v859_v16, %v858_v17  ;;  %v873_v1 = vmul.f32 %v858_v17, %v851_v23  ;;  %v877_v50 = vmul.f32 %v862_v4, %v855_v61 }
 0x39e   :  { %v878_v57 = vadd.f32 %v874_v62, %v873_v1  ;;  %v864_v5 = vadd.f32 %v863_v63, %v860_v60 }
 0x3a0   :  { %v865_v6 = vadd.f32 %v864_v5, %v861_v2  ;;  %v879_v7 = vadd.f32 %v878_v57, %v875_v3  ;;  %v1363_v3 = vld [vmem:[%s2138_s0] sm:$0xff] }
 0x3a2   :  { %v866_v8 = vadd.f32 %v865_v6, %v862_v4  ;;  %v880_v9 = vadd.f32 %v879_v7, %v876_v19 }
 0x3a4   :  { %v867_v35 = vrot.slane %v866_v8, 4  ;;  %v881_v10 = vadd.f32 %v880_v9, %v877_v50 }
 0x3a6   :  { %v868_v21 = vadd.f32 %v867_v35, %v866_v8  ;;  %v882_v51 = vrot.slane %v881_v10, 4 }
 0x3a8   :  { %v869_v53 = vrot.slane %v868_v21, 2  ;;  %v883_v11 = vadd.f32 %v882_v51, %v881_v10 }
 0x3aa   :  { %v884_v54 = vrot.slane %v883_v11, 2  ;;  %v870_v26 = vadd.f32 %v869_v53, %v868_v21 }
 0x3ac   :  { %v871_v0 = vrot.slane %v870_v26, 1  ;;  %v885_v55 = vadd.f32 %v884_v54, %v883_v11 }
 0x3ae   :  { %v886_v12 = vrot.slane %v885_v55, 1  ;;  %v872_v14 = vadd.f32 %v871_v0, %v870_v26 }
 0x3b0   :  { %v887_v33 = vadd.f32 %v886_v12, %v885_v55 }
 0x3b2   :  { %v888_v15 = vsel %vm386_vm3, %v872_v14, %v887_v33 }
 0x3b3   :  { %1346 = vmatmul.mubr.f32.vlgmr.msra.gmra.mxu1 %v888_v15 }
 0x473   :  { %v955_v18 = vpop.f32.mrf.mxu1 }
 0x474   :  { %v959_v20 = vmul.f32 0.001953125, %v955_v18 }
 0x475   :  { %v1347_v22 = vpop.f32.mrf.mxu1 }
 0x476   :  { %v960_v25 = vmul.f32 %v959_v20, %v959_v20 }
 0x478   :  { %v962_v27 = vrot.slane %v960_v25, 7 }
 0x47a   :  { %v964_v29 = vsub.f32 %v959_v20, %v962_v27 }
 0x47c   :  { %v965_v30 = vadd.f32 1e-05, %v964_v29 }
 0x47e   :  { %1361 = vrsqrt.f32 %v965_v30 }
 0x48b   :  { %v1362_v31 = vpop.eup %1361 }
 0x48c   :  { %v967_v32 = vsel %vm386_vm3, %v959_v20, %v1362_v31 }
 0x48d   :  { %1351 = vmatmul.mubr.msk.f32.vlgmr.msra.gmra.mxu0 %vm467_vm4, %v967_v32 }
 0x54d   :  { %v1037_v34 = vpop.f32.mrf.mxu0 }
 0x54e   :  { %v1048_v36 = vrot.slane %v1037_v34, %v1992_v13 }
 0x54f   :  { %v1352_v38 = vpop.f32.mrf.mxu0 }
 0x550   :  { %v1049_v39 = vcombine.high %v1048_v36, %v1048_v36 }
 0x552   :  { %v1056_v41 = vrot.slane %v1049_v39, %v1992_v13 }
 0x554   :  { %v1058_v42 = vmul.f32 %v1056_v41, %v856_v40 }
 0x556   :  { %v1059_v44 = vmul.f32 %v1058_v42, %v1037_v34  ;;  %v1065_v46 = vrot.slane %v1058_v42, %v2000_v28 }
 0x558   :  { %v1060_v52 = vsub.f32 %v857_v43, %v1059_v44  ;;  %v1067_v24 = vmul.f32 %v1065_v46, %v851_v23  ;;  %v1068_v47 = vmul.f32 %v1065_v46, %v2075_v37  ;;  %v1069_v16 = vmul.f32 %v1065_v46, %v2083_v45  ;;  %v1364_v37 = vld [vmem:[%s2138_s0 + $0x8] sm:$0xff] }
 0x559   :  { %v1070_v49 = vmul.f32 %v1065_v46, %v854_v48  ;;  %v1071_v17 = vmul.f32 %v1065_v46, %v855_v61 }
 0x55a   :  { %v1076_v60 = vrot.slane %v1060_v52, %v2000_v28 }
 0x55c   :  { %v1078_v62 = vadd.f32 %v1076_v60, %v1067_v24  ;;  %v1079_v13 = vadd.f32 %v1076_v60, %v1068_v47  ;;  %v1080_v63 = vadd.f32 %v1076_v60, %v1069_v16  ;;  %v1081_v1 = vadd.f32 %v1076_v60, %v1070_v49 }
 0x55d   :  { %v1082_v2 = vadd.f32 %v1076_v60, %v1071_v17 }
 0x55e   :  { %v1083_v57 = vadd.f32 %v1363_v3, %v1078_v62  ;;  %v1084_v23 = vadd.f32 %v1364_v37, %v1079_v13  ;;  %v1085_v45 = vadd.f32 %v1080_v63, %v1614_v56  ;;  %v1086_v28 = vadd.f32 %v1081_v1, %v1629_v58 }
 0x55f   :  { %v1087_v48 = vadd.f32 %v1082_v2, %v1639_v59 }
 0x560   :  { %1088 = vst [vmem:[%s2147_s10] sm:$0xff] %v1083_v57  ;;  %1089 = vst [vmem:[%s2147_s10 + $0x8] sm:$0xff] %v1084_v23 }
 0x561   :  { %1090 = vst [vmem:[%s2147_s10 + $0x10] sm:$0xff] %v1085_v45  ;;  %1091 = vst [vmem:[%s2147_s10 + $0x18] sm:$0xff] %v1086_v28 }
 0x562   :  { %1092 = vst [vmem:[%s2147_s10 + $0x20] sm:$0xff] %v1087_v48 }

</bundles_post_ra>
